<compile_context>
chip_gen: v5e
topology: v5e:2x2
jax: 0.10.0
libtpu: 0.0.40
codegen_flags: <defaults>
</compile_context>

<pallas_src>
import functools

import jax
import jax.numpy as jnp
import numpy as np
from jax.experimental import pallas as pl
from jax.experimental.pallas import tpu as pltpu


# ----------------------------- model config ---------------------------------
VOCAB_SIZE = 50
D_MODEL = 32          # == d_word_dim == d_model
N_LAYERS = 2
N_HEADS = 2
D_K = 16
D_V = 16
D_FFN = 64
PAD_IDX = 0
N_POSITION = 64
BATCH = 2
SEQ_LEN = 8
LN_EPS = 1e-6


# ----------------------------- shared math helper -----------------------------
def _layer_norm(x, gamma, beta, eps=LN_EPS):
    mu = jnp.mean(x, axis=-1, keepdims=True)
    var = jnp.mean((x - mu) ** 2, axis=-1, keepdims=True)
    return (x - mu) * jax.lax.rsqrt(var + eps) * gamma + beta


# ----------------------------- fused Pallas kernel ----------------------------
def fused_encoder_kernel(
    x_ref, pos_ref, mask_ref,
    wqkv_ref, bqkv_ref, wo_ref, bo_ref,
    ln1_g_ref, ln1_b_ref,
    w1_ref, b1_ref, w2_ref, b2_ref,
    ln2_g_ref, ln2_b_ref,
    fin_g_ref, fin_b_ref,
    o_ref,
    *, n_layers, n_heads, d_k, d_v, batch, seq_len,
):
    """Entire encoder forward for the whole batch in one kernel invocation."""
    B, L, H = batch, seq_len, n_heads
    D = x_ref.shape[-1]
    BL = B * L
    hdk = H * d_k
    scale = 1.0 / (d_k ** 0.5)

    # embedding output + sinusoid positional encoding (dropout = identity in eval)
    x = (x_ref[...] + pos_ref[...][None, :, :]).reshape(BL, D)       # (B*L, D)

    # additive key-padding bias, computed ONCE for all layers and heads
    mask_bias = (mask_ref[...] - 1.0) * 1e9                          # (B, 1, L)

    for li in range(n_layers):
        # ---------- multi-head self-attention (fused QKV projection) ----------
        qkv = jnp.dot(x, wqkv_ref[li],
                      preferred_element_type=jnp.float32) + bqkv_ref[li]
        wo = wo_ref[li]                                              # (H*d_v, D)

        attn = jnp.zeros((BL, D), jnp.float32)
        for h in range(H):
            qh = qkv[:, h * d_k:(h + 1) * d_k].reshape(B, L, d_k)
            kh = qkv[:, hdk + h * d_k: hdk + (h + 1) * d_k].reshape(B, L, d_k)
            vh = qkv[:, 2 * hdk + h * d_v: 2 * hdk + (h + 1) * d_v].reshape(B, L, d_v)

            s = jnp.einsum('bqd,bkd->bqk', qh, kh,
                           preferred_element_type=jnp.float32) * scale
            s = s + mask_bias                                        # mask padded keys
            s = s - jnp.max(s, axis=-1, keepdims=True)
            p = jnp.exp(s)
            p = p * pl.reciprocal(jnp.sum(p, axis=-1, keepdims=True), approx=True)

            oh = jnp.einsum('bqk,bkd->bqd', p, vh,
                            preferred_element_type=jnp.float32)      # (B, L, d_v)
            # concat(head_0..head_{H-1}) @ Wo == sum_h head_h @ Wo[h*d_v:(h+1)*d_v]
            attn = attn + jnp.dot(oh.reshape(BL, d_v),
                                  wo[h * d_v:(h + 1) * d_v, :],
                                  preferred_element_type=jnp.float32)
        attn = attn + bo_ref[li]
        x = _layer_norm(attn + x, ln1_g_ref[li], ln1_b_ref[li])

        # ---------- position-wise feed-forward ----------
        h1 = jnp.dot(x, w1_ref[li],
                     preferred_element_type=jnp.float32) + b1_ref[li]
        h1 = jnp.maximum(h1, 0.0)
        ffn = jnp.dot(h1, w2_ref[li],
                      preferred_element_type=jnp.float32) + b2_ref[li]
        x = _layer_norm(ffn + x, ln2_g_ref[li], ln2_b_ref[li])

    # ---------- final LayerNorm ----------
    o_ref[...] = _layer_norm(x, fin_g_ref[...], fin_b_ref[...]).reshape(B, L, D)


# ----------------------------- wrapper -----------------------------------------
def run_fused_encoder(x_emb, pos, mask_f, p):
    """x_emb: (B, L, D) f32, pos: (L, D) f32, mask_f: (B, 1, L) f32."""
    B, L, D = x_emb.shape
    kernel = functools.partial(
        fused_encoder_kernel,
        n_layers=N_LAYERS, n_heads=N_HEADS, d_k=D_K, d_v=D_V,
        batch=B, seq_len=L)

    operands = (
        x_emb, pos, mask_f,
        p["wqkv"], p["bqkv"], p["wo"], p["bo"],
        p["ln1_g"], p["ln1_b"],
        p["w1"], p["b1"], p["w2"], p["b2"],
        p["ln2_g"], p["ln2_b"],
        p["final_ln_g"], p["final_ln_b"],
    )
    # grid=() single invocation; everything is a full-array, untiled VMEM operand.
    return pl.pallas_call(
        kernel,
        out_shape=jax.ShapeDtypeStruct((B, L, D), jnp.float32),
        in_specs=[pl.BlockSpec(memory_space=pltpu.MemorySpace.VMEM)
                  for _ in operands],
        out_specs=pl.BlockSpec(memory_space=pltpu.MemorySpace.VMEM),
    )(*operands)


# ----------------------------- parameter setup --------------------------------
def sinusoid_table(n_position, d):
    pos = np.arange(n_position, dtype=np.float64)[:, None]
    i = np.arange(d, dtype=np.float64)[None, :]
    angle = pos / np.power(10000.0, 2.0 * (i // 2) / d)
    table = np.zeros((n_position, d), dtype=np.float64)
    table[:, 0::2] = np.sin(angle[:, 0::2])
    table[:, 1::2] = np.cos(angle[:, 1::2])
    return jnp.asarray(table, dtype=jnp.float32)


def init_params(key):
    def nrm(k, shape, scale=0.05):
        return scale * jax.random.normal(k, shape, dtype=jnp.float32)

    keys = jax.random.split(key, 2 + N_LAYERS)
    # embedding (padding_idx row zeroed, matching nn.Embedding(padding_idx=...))
    emb = nrm(keys[0], (VOCAB_SIZE, D_MODEL), scale=0.1)
    emb = emb.at[PAD_IDX].set(0.0)

    wqkv, wo, w1, w2 = [], [], [], []
    for li in range(N_LAYERS):
        ks = jax.random.split(keys[2 + li], 4)
        wqkv.append(nrm(ks[0], (D_MODEL, 2 * N_HEADS * D_K + N_HEADS * D_V)))
        wo.append(nrm(ks[1], (N_HEADS * D_V, D_MODEL)))
        w1.append(nrm(ks[2], (D_MODEL, D_FFN)))
        w2.append(nrm(ks[3], (D_FFN, D_MODEL)))

    zeros = lambda s: jnp.zeros(s, jnp.float32)
    ones = lambda s: jnp.ones(s, jnp.float32)
    NL = N_LAYERS
    return dict(
        emb=emb,
        pos_table=sinusoid_table(N_POSITION, D_MODEL),
        wqkv=jnp.stack(wqkv),
        bqkv=zeros((NL, 1, 2 * N_HEADS * D_K + N_HEADS * D_V)),
        wo=jnp.stack(wo), bo=zeros((NL, 1, D_MODEL)),
        ln1_g=ones((NL, 1, D_MODEL)), ln1_b=zeros((NL, 1, D_MODEL)),
        w1=jnp.stack(w1), b1=zeros((NL, 1, D_FFN)),
        w2=jnp.stack(w2), b2=zeros((NL, 1, D_MODEL)),
        ln2_g=ones((NL, 1, D_MODEL)), ln2_b=zeros((NL, 1, D_MODEL)),
        final_ln_g=ones((1, D_MODEL)), final_ln_b=zeros((1, D_MODEL)),
    )


# ----------------------------- forward ----------------------------------------
def encoder_forward(inputs, params):
    """inputs: (B, L) int32 token ids.  Returns (enc_output, padding_mask)."""
    B, L = inputs.shape
    padding_mask = (inputs != PAD_IDX)[:, None, :]              # (B, 1, L) bool
    mask_f = padding_mask.astype(jnp.float32)

    x = jnp.take(params["emb"], inputs, axis=0).astype(jnp.float32)   # (B, L, D)
    pos = params["pos_table"][:L]                                      # (L, D)

    out = run_fused_encoder(x, pos, mask_f, params)
    return out, padding_mask


encoder_forward_jit = jax.jit(encoder_forward)


# ----------------------------- pure-JAX reference ------------------------------
def encoder_forward_ref(inputs, params):
    B, L = inputs.shape
    mask = (inputs != PAD_IDX)[:, None, :].astype(jnp.float32)      # (B, 1, L)
    x = jnp.take(params["emb"], inputs, axis=0) + params["pos_table"][:L][None]
    hdk = N_HEADS * D_K
    for li in range(N_LAYERS):
        qkv = x @ params["wqkv"][li] + params["bqkv"][li]           # (B, L, 3*H*dk)
        q = qkv[..., :hdk].reshape(B, L, N_HEADS, D_K).transpose(0, 2, 1, 3)
        k = qkv[..., hdk:2 * hdk].reshape(B, L, N_HEADS, D_K).transpose(0, 2, 1, 3)
        v = qkv[..., 2 * hdk:].reshape(B, L, N_HEADS, D_V).transpose(0, 2, 1, 3)
        s = jnp.einsum('bhqd,bhkd->bhqk', q, k) / (D_K ** 0.5)
        s = jnp.where(mask[:, None, :, :] > 0, s, -1e9)
        p = jax.nn.softmax(s, axis=-1)
        o = jnp.einsum('bhqk,bhkd->bhqd', p, v).transpose(0, 2, 1, 3).reshape(B, L, -1)
        attn = o @ params["wo"][li] + params["bo"][li]
        x = _layer_norm(attn + x, params["ln1_g"][li], params["ln1_b"][li])
        h1 = jnp.maximum(x @ params["w1"][li] + params["b1"][li], 0.0)
        ffn = h1 @ params["w2"][li] + params["b2"][li]
        x = _layer_norm(ffn + x, params["ln2_g"][li], params["ln2_b"][li])
    return _layer_norm(x, params["final_ln_g"], params["final_ln_b"])


# ----------------------------- main --------------------------------------------
if __name__ == "__main__":
    key = jax.random.PRNGKey(0)
    k_param, k_inp = jax.random.split(key)

    params = init_params(k_param)

    inputs = jax.random.randint(k_inp, (BATCH, SEQ_LEN), 1, VOCAB_SIZE, dtype=jnp.int32)
    # add some padding tokens so the mask path is exercised
    inputs = inputs.at[1, -2:].set(PAD_IDX)

    enc_output, padding_mask = encoder_forward_jit(inputs, params)
    enc_output = jax.block_until_ready(enc_output)
    padding_mask = jax.block_until_ready(padding_mask)

    assert enc_output.shape == (BATCH, SEQ_LEN, D_MODEL)
    assert padding_mask.shape == (BATCH, 1, SEQ_LEN)
    assert bool(jnp.all(jnp.isfinite(enc_output)))

    ref = encoder_forward_ref(inputs, params)
    assert bool(jnp.allclose(enc_output, ref, atol=2e-2, rtol=2e-2))

    print("KERNEL_OK")
</pallas_src>

<mosaic_0001>
module attributes {stable_mosaic.version = 11 : i64} {
  func.func @fused_encoder_kernel(%arg0: memref<2x8x32xf32, #tpu.memory_space<vmem>>, %arg1: memref<8x32xf32, #tpu.memory_space<vmem>>, %arg2: memref<2x1x8xf32, #tpu.memory_space<vmem>>, %arg3: memref<2x32x96xf32, #tpu.memory_space<vmem>>, %arg4: memref<2x1x96xf32, #tpu.memory_space<vmem>>, %arg5: memref<2x32x32xf32, #tpu.memory_space<vmem>>, %arg6: memref<2x1x32xf32, #tpu.memory_space<vmem>>, %arg7: memref<2x1x32xf32, #tpu.memory_space<vmem>>, %arg8: memref<2x1x32xf32, #tpu.memory_space<vmem>>, %arg9: memref<2x32x64xf32, #tpu.memory_space<vmem>>, %arg10: memref<2x1x64xf32, #tpu.memory_space<vmem>>, %arg11: memref<2x64x32xf32, #tpu.memory_space<vmem>>, %arg12: memref<2x1x32xf32, #tpu.memory_space<vmem>>, %arg13: memref<2x1x32xf32, #tpu.memory_space<vmem>>, %arg14: memref<2x1x32xf32, #tpu.memory_space<vmem>>, %arg15: memref<1x32xf32, #tpu.memory_space<vmem>>, %arg16: memref<1x32xf32, #tpu.memory_space<vmem>>, %arg17: memref<2x8x32xf32, #tpu.memory_space<vmem>>) attributes {dimension_semantics = [], scalar_prefetch = 0 : i64, scratch_operands = 0 : i64, tpu.core_type = #tpu.core_type<tc>} {
    %c0 = arith.constant 0 : index
    %c0_0 = arith.constant 0 : index
    %c0_1 = arith.constant 0 : index
    %0 = vector.load %arg0[%c0, %c0_0, %c0_1] : memref<2x8x32xf32, #tpu.memory_space<vmem>>, vector<2x8x32xf32>
    %c0_2 = arith.constant 0 : index
    %c0_3 = arith.constant 0 : index
    %1 = vector.load %arg1[%c0_2, %c0_3] : memref<8x32xf32, #tpu.memory_space<vmem>>, vector<8x32xf32>
    %2 = vector.shape_cast %1 : vector<8x32xf32> to vector<1x8x32xf32>
    %3 = vector.broadcast %2 : vector<1x8x32xf32> to vector<2x8x32xf32>
    %4 = arith.addf %0, %3 : vector<2x8x32xf32>
    %5 = vector.shape_cast %4 : vector<2x8x32xf32> to vector<16x32xf32>
    %c0_4 = arith.constant 0 : index
    %c0_5 = arith.constant 0 : index
    %c0_6 = arith.constant 0 : index
    %6 = vector.load %arg2[%c0_4, %c0_5, %c0_6] : memref<2x1x8xf32, #tpu.memory_space<vmem>>, vector<2x1x8xf32>
    %cst = arith.constant 1.000000e+00 : f32
    %7 = vector.broadcast %cst : f32 to vector<2x1x8xf32>
    %8 = arith.subf %6, %7 : vector<2x1x8xf32>
    %cst_7 = arith.constant 1.000000e+09 : f32
    %9 = vector.broadcast %cst_7 : f32 to vector<2x1x8xf32>
    %10 = arith.mulf %8, %9 : vector<2x1x8xf32>
    %c0_8 = arith.constant 0 : index
    %c0_9 = arith.constant 0 : index
    %c0_10 = arith.constant 0 : index
    %11 = vector.load %arg3[%c0_8, %c0_9, %c0_10] : memref<2x32x96xf32, #tpu.memory_space<vmem>>, vector<1x32x96xf32>
    %12 = vector.shape_cast %11 : vector<1x32x96xf32> to vector<32x96xf32>
    %cst_11 = arith.constant dense<0.000000e+00> : vector<16x96xf32>
    %13 = tpu.matmul %5, %12, %cst_11 {dimension_numbers = #tpu.dot_dimension_numbers<[1], [0], [0], [1], [0, 0, 1, 1], [], []>} : vector<16x32xf32>, vector<32x96xf32>, vector<16x96xf32> -> vector<16x96xf32>
    %c0_12 = arith.constant 0 : index
    %c0_13 = arith.constant 0 : index
    %c0_14 = arith.constant 0 : index
    %14 = vector.load %arg4[%c0_12, %c0_13, %c0_14] : memref<2x1x96xf32, #tpu.memory_space<vmem>>, vector<1x1x96xf32>
    %15 = vector.shape_cast %14 : vector<1x1x96xf32> to vector<1x96xf32>
    %16 = vector.broadcast %15 : vector<1x96xf32> to vector<16x96xf32>
    %17 = arith.addf %13, %16 : vector<16x96xf32>
    %c0_15 = arith.constant 0 : index
    %c0_16 = arith.constant 0 : index
    %c0_17 = arith.constant 0 : index
    %18 = vector.load %arg5[%c0_15, %c0_16, %c0_17] : memref<2x32x32xf32, #tpu.memory_space<vmem>>, vector<1x32x32xf32>
    %19 = vector.shape_cast %18 : vector<1x32x32xf32> to vector<32x32xf32>
    %cst_18 = arith.constant 0.000000e+00 : f32
    %20 = vector.broadcast %cst_18 : f32 to vector<16x32xf32>
    %21 = vector.extract_strided_slice %17 {offsets = [0, 0], sizes = [16, 16], strides = [1, 1]} : vector<16x96xf32> to vector<16x16xf32>
    %22 = vector.shape_cast %21 : vector<16x16xf32> to vector<2x8x16xf32>
    %23 = vector.extract_strided_slice %17 {offsets = [0, 32], sizes = [16, 16], strides = [1, 1]} : vector<16x96xf32> to vector<16x16xf32>
    %24 = vector.shape_cast %23 : vector<16x16xf32> to vector<2x8x16xf32>
    %25 = vector.extract_strided_slice %17 {offsets = [0, 64], sizes = [16, 16], strides = [1, 1]} : vector<16x96xf32> to vector<16x16xf32>
    %26 = vector.shape_cast %25 : vector<16x16xf32> to vector<2x8x16xf32>
    "tpu.trace_start"() <{level = 10 : i32, message = "bqd,bkd->bqk"}> : () -> ()
    %cst_19 = arith.constant dense<0.000000e+00> : vector<2x8x8xf32>
    %27 = tpu.matmul %22, %24, %cst_19 {dimension_numbers = #tpu.dot_dimension_numbers<[2], [2], [1], [1], [0, 0, 0, 1, 1, 1], [0], [0]>} : vector<2x8x16xf32>, vector<2x8x16xf32>, vector<2x8x8xf32> -> vector<2x8x8xf32>
    "tpu.trace_stop"() : () -> ()
    %cst_20 = arith.constant 2.500000e-01 : f32
    %28 = vector.broadcast %cst_20 : f32 to vector<2x8x8xf32>
    %29 = arith.mulf %27, %28 : vector<2x8x8xf32>
    %30 = vector.broadcast %10 : vector<2x1x8xf32> to vector<2x8x8xf32>
    %31 = arith.addf %29, %30 : vector<2x8x8xf32>
    %cst_21 = arith.constant dense<0xFF800000> : vector<2x8xf32>
    %32 = vector.multi_reduction <maximumf>, %31, %cst_21 [2] : vector<2x8x8xf32> to vector<2x8xf32>
    %33 = vector.shape_cast %32 : vector<2x8xf32> to vector<2x8x1xf32>
    %34 = vector.broadcast %33 : vector<2x8x1xf32> to vector<2x8x8xf32>
    %35 = arith.subf %31, %34 : vector<2x8x8xf32>
    %36 = math.exp %35 : vector<2x8x8xf32>
    %cst_22 = arith.constant dense<0.000000e+00> : vector<2x8xf32>
    %37 = vector.multi_reduction <add>, %36, %cst_22 [2] : vector<2x8x8xf32> to vector<2x8xf32>
    %38 = vector.shape_cast %37 : vector<2x8xf32> to vector<2x8x1xf32>
    %39 = tpu.reciprocal %38 {approx = true} : vector<2x8x1xf32> -> vector<2x8x1xf32>
    %40 = vector.broadcast %39 : vector<2x8x1xf32> to vector<2x8x8xf32>
    %41 = arith.mulf %36, %40 : vector<2x8x8xf32>
    "tpu.trace_start"() <{level = 10 : i32, message = "bqk,bkd->bqd"}> : () -> ()
    %cst_23 = arith.constant dense<0.000000e+00> : vector<2x8x16xf32>
    %42 = tpu.matmul %41, %26, %cst_23 {dimension_numbers = #tpu.dot_dimension_numbers<[2], [1], [1], [2], [0, 0, 0, 1, 1, 2], [0], [0]>} : vector<2x8x8xf32>, vector<2x8x16xf32>, vector<2x8x16xf32> -> vector<2x8x16xf32>
    "tpu.trace_stop"() : () -> ()
    %43 = vector.shape_cast %42 : vector<2x8x16xf32> to vector<16x16xf32>
    %44 = vector.extract_strided_slice %19 {offsets = [0, 0], sizes = [16, 32], strides = [1, 1]} : vector<32x32xf32> to vector<16x32xf32>
    %cst_24 = arith.constant dense<0.000000e+00> : vector<16x32xf32>
    %45 = tpu.matmul %43, %44, %cst_24 {dimension_numbers = #tpu.dot_dimension_numbers<[1], [0], [0], [1], [0, 0, 1, 1], [], []>} : vector<16x16xf32>, vector<16x32xf32>, vector<16x32xf32> -> vector<16x32xf32>
    %46 = arith.addf %20, %45 : vector<16x32xf32>
    %47 = vector.extract_strided_slice %17 {offsets = [0, 16], sizes = [16, 16], strides = [1, 1]} : vector<16x96xf32> to vector<16x16xf32>
    %48 = vector.shape_cast %47 : vector<16x16xf32> to vector<2x8x16xf32>
    %49 = vector.extract_strided_slice %17 {offsets = [0, 48], sizes = [16, 16], strides = [1, 1]} : vector<16x96xf32> to vector<16x16xf32>
    %50 = vector.shape_cast %49 : vector<16x16xf32> to vector<2x8x16xf32>
    %51 = vector.extract_strided_slice %17 {offsets = [0, 80], sizes = [16, 16], strides = [1, 1]} : vector<16x96xf32> to vector<16x16xf32>
    %52 = vector.shape_cast %51 : vector<16x16xf32> to vector<2x8x16xf32>
    "tpu.trace_start"() <{level = 10 : i32, message = "bqd,bkd->bqk"}> : () -> ()
    %cst_25 = arith.constant dense<0.000000e+00> : vector<2x8x8xf32>
    %53 = tpu.matmul %48, %50, %cst_25 {dimension_numbers = #tpu.dot_dimension_numbers<[2], [2], [1], [1], [0, 0, 0, 1, 1, 1], [0], [0]>} : vector<2x8x16xf32>, vector<2x8x16xf32>, vector<2x8x8xf32> -> vector<2x8x8xf32>
    "tpu.trace_stop"() : () -> ()
    %cst_26 = arith.constant 2.500000e-01 : f32
    %54 = vector.broadcast %cst_26 : f32 to vector<2x8x8xf32>
    %55 = arith.mulf %53, %54 : vector<2x8x8xf32>
    %56 = vector.broadcast %10 : vector<2x1x8xf32> to vector<2x8x8xf32>
    %57 = arith.addf %55, %56 : vector<2x8x8xf32>
    %cst_27 = arith.constant dense<0xFF800000> : vector<2x8xf32>
    %58 = vector.multi_reduction <maximumf>, %57, %cst_27 [2] : vector<2x8x8xf32> to vector<2x8xf32>
    %59 = vector.shape_cast %58 : vector<2x8xf32> to vector<2x8x1xf32>
    %60 = vector.broadcast %59 : vector<2x8x1xf32> to vector<2x8x8xf32>
    %61 = arith.subf %57, %60 : vector<2x8x8xf32>
    %62 = math.exp %61 : vector<2x8x8xf32>
    %cst_28 = arith.constant dense<0.000000e+00> : vector<2x8xf32>
    %63 = vector.multi_reduction <add>, %62, %cst_28 [2] : vector<2x8x8xf32> to vector<2x8xf32>
    %64 = vector.shape_cast %63 : vector<2x8xf32> to vector<2x8x1xf32>
    %65 = tpu.reciprocal %64 {approx = true} : vector<2x8x1xf32> -> vector<2x8x1xf32>
    %66 = vector.broadcast %65 : vector<2x8x1xf32> to vector<2x8x8xf32>
    %67 = arith.mulf %62, %66 : vector<2x8x8xf32>
    "tpu.trace_start"() <{level = 10 : i32, message = "bqk,bkd->bqd"}> : () -> ()
    %cst_29 = arith.constant dense<0.000000e+00> : vector<2x8x16xf32>
    %68 = tpu.matmul %67, %52, %cst_29 {dimension_numbers = #tpu.dot_dimension_numbers<[2], [1], [1], [2], [0, 0, 0, 1, 1, 2], [0], [0]>} : vector<2x8x8xf32>, vector<2x8x16xf32>, vector<2x8x16xf32> -> vector<2x8x16xf32>
    "tpu.trace_stop"() : () -> ()
    %69 = vector.shape_cast %68 : vector<2x8x16xf32> to vector<16x16xf32>
    %70 = vector.extract_strided_slice %19 {offsets = [16, 0], sizes = [16, 32], strides = [1, 1]} : vector<32x32xf32> to vector<16x32xf32>
    %cst_30 = arith.constant dense<0.000000e+00> : vector<16x32xf32>
    %71 = tpu.matmul %69, %70, %cst_30 {dimension_numbers = #tpu.dot_dimension_numbers<[1], [0], [0], [1], [0, 0, 1, 1], [], []>} : vector<16x16xf32>, vector<16x32xf32>, vector<16x32xf32> -> vector<16x32xf32>
    %72 = arith.addf %46, %71 : vector<16x32xf32>
    %c0_31 = arith.constant 0 : index
    %c0_32 = arith.constant 0 : index
    %c0_33 = arith.constant 0 : index
    %73 = vector.load %arg6[%c0_31, %c0_32, %c0_33] : memref<2x1x32xf32, #tpu.memory_space<vmem>>, vector<1x1x32xf32>
    %74 = vector.shape_cast %73 : vector<1x1x32xf32> to vector<1x32xf32>
    %75 = vector.broadcast %74 : vector<1x32xf32> to vector<16x32xf32>
    %76 = arith.addf %72, %75 : vector<16x32xf32>
    %77 = arith.addf %76, %5 : vector<16x32xf32>
    %c0_34 = arith.constant 0 : index
    %c0_35 = arith.constant 0 : index
    %c0_36 = arith.constant 0 : index
    %78 = vector.load %arg7[%c0_34, %c0_35, %c0_36] : memref<2x1x32xf32, #tpu.memory_space<vmem>>, vector<1x1x32xf32>
    %79 = vector.shape_cast %78 : vector<1x1x32xf32> to vector<1x32xf32>
    %c0_37 = arith.constant 0 : index
    %c0_38 = arith.constant 0 : index
    %c0_39 = arith.constant 0 : index
    %80 = vector.load %arg8[%c0_37, %c0_38, %c0_39] : memref<2x1x32xf32, #tpu.memory_space<vmem>>, vector<1x1x32xf32>
    %81 = vector.shape_cast %80 : vector<1x1x32xf32> to vector<1x32xf32>
    %cst_40 = arith.constant dense<0.000000e+00> : vector<16xf32>
    %82 = vector.multi_reduction <add>, %77, %cst_40 [1] : vector<16x32xf32> to vector<16xf32>
    %83 = vector.shape_cast %82 : vector<16xf32> to vector<16x1xf32>
    %cst_41 = arith.constant 3.200000e+01 : f32
    %84 = vector.broadcast %cst_41 : f32 to vector<16x1xf32>
    %85 = arith.divf %83, %84 : vector<16x1xf32>
    %86 = vector.broadcast %85 : vector<16x1xf32> to vector<16x32xf32>
    %87 = arith.subf %77, %86 : vector<16x32xf32>
    %88 = arith.mulf %87, %87 : vector<16x32xf32>
    %cst_42 = arith.constant dense<0.000000e+00> : vector<16xf32>
    %89 = vector.multi_reduction <add>, %88, %cst_42 [1] : vector<16x32xf32> to vector<16xf32>
    %90 = vector.shape_cast %89 : vector<16xf32> to vector<16x1xf32>
    %cst_43 = arith.constant 3.200000e+01 : f32
    %91 = vector.broadcast %cst_43 : f32 to vector<16x1xf32>
    %92 = arith.divf %90, %91 : vector<16x1xf32>
    %93 = vector.broadcast %85 : vector<16x1xf32> to vector<16x32xf32>
    %94 = arith.subf %77, %93 : vector<16x32xf32>
    %cst_44 = arith.constant 9.99999997E-7 : f32
    %95 = vector.broadcast %cst_44 : f32 to vector<16x1xf32>
    %96 = arith.addf %92, %95 : vector<16x1xf32>
    %97 = math.rsqrt %96 : vector<16x1xf32>
    %98 = vector.broadcast %97 : vector<16x1xf32> to vector<16x32xf32>
    %99 = arith.mulf %94, %98 : vector<16x32xf32>
    %100 = vector.broadcast %79 : vector<1x32xf32> to vector<16x32xf32>
    %101 = arith.mulf %99, %100 : vector<16x32xf32>
    %102 = vector.broadcast %81 : vector<1x32xf32> to vector<16x32xf32>
    %103 = arith.addf %101, %102 : vector<16x32xf32>
    %c0_45 = arith.constant 0 : index
    %c0_46 = arith.constant 0 : index
    %c0_47 = arith.constant 0 : index
    %104 = vector.load %arg9[%c0_45, %c0_46, %c0_47] : memref<2x32x64xf32, #tpu.memory_space<vmem>>, vector<1x32x64xf32>
    %105 = vector.shape_cast %104 : vector<1x32x64xf32> to vector<32x64xf32>
    %cst_48 = arith.constant dense<0.000000e+00> : vector<16x64xf32>
    %106 = tpu.matmul %103, %105, %cst_48 {dimension_numbers = #tpu.dot_dimension_numbers<[1], [0], [0], [1], [0, 0, 1, 1], [], []>} : vector<16x32xf32>, vector<32x64xf32>, vector<16x64xf32> -> vector<16x64xf32>
    %c0_49 = arith.constant 0 : index
    %c0_50 = arith.constant 0 : index
    %c0_51 = arith.constant 0 : index
    %107 = vector.load %arg10[%c0_49, %c0_50, %c0_51] : memref<2x1x64xf32, #tpu.memory_space<vmem>>, vector<1x1x64xf32>
    %108 = vector.shape_cast %107 : vector<1x1x64xf32> to vector<1x64xf32>
    %109 = vector.broadcast %108 : vector<1x64xf32> to vector<16x64xf32>
    %110 = arith.addf %106, %109 : vector<16x64xf32>
    %cst_52 = arith.constant 0.000000e+00 : f32
    %111 = vector.broadcast %cst_52 : f32 to vector<16x64xf32>
    %112 = arith.maximumf %110, %111 : vector<16x64xf32>
    %c0_53 = arith.constant 0 : index
    %c0_54 = arith.constant 0 : index
    %c0_55 = arith.constant 0 : index
    %113 = vector.load %arg11[%c0_53, %c0_54, %c0_55] : memref<2x64x32xf32, #tpu.memory_space<vmem>>, vector<1x64x32xf32>
    %114 = vector.shape_cast %113 : vector<1x64x32xf32> to vector<64x32xf32>
    %cst_56 = arith.constant dense<0.000000e+00> : vector<16x32xf32>
    %115 = tpu.matmul %112, %114, %cst_56 {dimension_numbers = #tpu.dot_dimension_numbers<[1], [0], [0], [1], [0, 0, 1, 1], [], []>} : vector<16x64xf32>, vector<64x32xf32>, vector<16x32xf32> -> vector<16x32xf32>
    %c0_57 = arith.constant 0 : index
    %c0_58 = arith.constant 0 : index
    %c0_59 = arith.constant 0 : index
    %116 = vector.load %arg12[%c0_57, %c0_58, %c0_59] : memref<2x1x32xf32, #tpu.memory_space<vmem>>, vector<1x1x32xf32>
    %117 = vector.shape_cast %116 : vector<1x1x32xf32> to vector<1x32xf32>
    %118 = vector.broadcast %117 : vector<1x32xf32> to vector<16x32xf32>
    %119 = arith.addf %115, %118 : vector<16x32xf32>
    %120 = arith.addf %119, %103 : vector<16x32xf32>
    %c0_60 = arith.constant 0 : index
    %c0_61 = arith.constant 0 : index
    %c0_62 = arith.constant 0 : index
    %121 = vector.load %arg13[%c0_60, %c0_61, %c0_62] : memref<2x1x32xf32, #tpu.memory_space<vmem>>, vector<1x1x32xf32>
    %122 = vector.shape_cast %121 : vector<1x1x32xf32> to vector<1x32xf32>
    %c0_63 = arith.constant 0 : index
    %c0_64 = arith.constant 0 : index
    %c0_65 = arith.constant 0 : index
    %123 = vector.load %arg14[%c0_63, %c0_64, %c0_65] : memref<2x1x32xf32, #tpu.memory_space<vmem>>, vector<1x1x32xf32>
    %124 = vector.shape_cast %123 : vector<1x1x32xf32> to vector<1x32xf32>
    %cst_66 = arith.constant dense<0.000000e+00> : vector<16xf32>
    %125 = vector.multi_reduction <add>, %120, %cst_66 [1] : vector<16x32xf32> to vector<16xf32>
    %126 = vector.shape_cast %125 : vector<16xf32> to vector<16x1xf32>
    %cst_67 = arith.constant 3.200000e+01 : f32
    %127 = vector.broadcast %cst_67 : f32 to vector<16x1xf32>
    %128 = arith.divf %126, %127 : vector<16x1xf32>
    %129 = vector.broadcast %128 : vector<16x1xf32> to vector<16x32xf32>
    %130 = arith.subf %120, %129 : vector<16x32xf32>
    %131 = arith.mulf %130, %130 : vector<16x32xf32>
    %cst_68 = arith.constant dense<0.000000e+00> : vector<16xf32>
    %132 = vector.multi_reduction <add>, %131, %cst_68 [1] : vector<16x32xf32> to vector<16xf32>
    %133 = vector.shape_cast %132 : vector<16xf32> to vector<16x1xf32>
    %cst_69 = arith.constant 3.200000e+01 : f32
    %134 = vector.broadcast %cst_69 : f32 to vector<16x1xf32>
    %135 = arith.divf %133, %134 : vector<16x1xf32>
    %136 = vector.broadcast %128 : vector<16x1xf32> to vector<16x32xf32>
    %137 = arith.subf %120, %136 : vector<16x32xf32>
    %cst_70 = arith.constant 9.99999997E-7 : f32
    %138 = vector.broadcast %cst_70 : f32 to vector<16x1xf32>
    %139 = arith.addf %135, %138 : vector<16x1xf32>
    %140 = math.rsqrt %139 : vector<16x1xf32>
    %141 = vector.broadcast %140 : vector<16x1xf32> to vector<16x32xf32>
    %142 = arith.mulf %137, %141 : vector<16x32xf32>
    %143 = vector.broadcast %122 : vector<1x32xf32> to vector<16x32xf32>
    %144 = arith.mulf %142, %143 : vector<16x32xf32>
    %145 = vector.broadcast %124 : vector<1x32xf32> to vector<16x32xf32>
    %146 = arith.addf %144, %145 : vector<16x32xf32>
    %c1 = arith.constant 1 : index
    %c0_71 = arith.constant 0 : index
    %c0_72 = arith.constant 0 : index
    %147 = vector.load %arg3[%c1, %c0_71, %c0_72] : memref<2x32x96xf32, #tpu.memory_space<vmem>>, vector<1x32x96xf32>
    %148 = vector.shape_cast %147 : vector<1x32x96xf32> to vector<32x96xf32>
    %cst_73 = arith.constant dense<0.000000e+00> : vector<16x96xf32>
    %149 = tpu.matmul %146, %148, %cst_73 {dimension_numbers = #tpu.dot_dimension_numbers<[1], [0], [0], [1], [0, 0, 1, 1], [], []>} : vector<16x32xf32>, vector<32x96xf32>, vector<16x96xf32> -> vector<16x96xf32>
    %c1_74 = arith.constant 1 : index
    %c0_75 = arith.constant 0 : index
    %c0_76 = arith.constant 0 : index
    %150 = vector.load %arg4[%c1_74, %c0_75, %c0_76] : memref<2x1x96xf32, #tpu.memory_space<vmem>>, vector<1x1x96xf32>
    %151 = vector.shape_cast %150 : vector<1x1x96xf32> to vector<1x96xf32>
    %152 = vector.broadcast %151 : vector<1x96xf32> to vector<16x96xf32>
    %153 = arith.addf %149, %152 : vector<16x96xf32>
    %c1_77 = arith.constant 1 : index
    %c0_78 = arith.constant 0 : index
    %c0_79 = arith.constant 0 : index
    %154 = vector.load %arg5[%c1_77, %c0_78, %c0_79] : memref<2x32x32xf32, #tpu.memory_space<vmem>>, vector<1x32x32xf32>
    %155 = vector.shape_cast %154 : vector<1x32x32xf32> to vector<32x32xf32>
    %cst_80 = arith.constant 0.000000e+00 : f32
    %156 = vector.broadcast %cst_80 : f32 to vector<16x32xf32>
    %157 = vector.extract_strided_slice %153 {offsets = [0, 0], sizes = [16, 16], strides = [1, 1]} : vector<16x96xf32> to vector<16x16xf32>
    %158 = vector.shape_cast %157 : vector<16x16xf32> to vector<2x8x16xf32>
    %159 = vector.extract_strided_slice %153 {offsets = [0, 32], sizes = [16, 16], strides = [1, 1]} : vector<16x96xf32> to vector<16x16xf32>
    %160 = vector.shape_cast %159 : vector<16x16xf32> to vector<2x8x16xf32>
    %161 = vector.extract_strided_slice %153 {offsets = [0, 64], sizes = [16, 16], strides = [1, 1]} : vector<16x96xf32> to vector<16x16xf32>
    %162 = vector.shape_cast %161 : vector<16x16xf32> to vector<2x8x16xf32>
    "tpu.trace_start"() <{level = 10 : i32, message = "bqd,bkd->bqk"}> : () -> ()
    %cst_81 = arith.constant dense<0.000000e+00> : vector<2x8x8xf32>
    %163 = tpu.matmul %158, %160, %cst_81 {dimension_numbers = #tpu.dot_dimension_numbers<[2], [2], [1], [1], [0, 0, 0, 1, 1, 1], [0], [0]>} : vector<2x8x16xf32>, vector<2x8x16xf32>, vector<2x8x8xf32> -> vector<2x8x8xf32>
    "tpu.trace_stop"() : () -> ()
    %cst_82 = arith.constant 2.500000e-01 : f32
    %164 = vector.broadcast %cst_82 : f32 to vector<2x8x8xf32>
    %165 = arith.mulf %163, %164 : vector<2x8x8xf32>
    %166 = vector.broadcast %10 : vector<2x1x8xf32> to vector<2x8x8xf32>
    %167 = arith.addf %165, %166 : vector<2x8x8xf32>
    %cst_83 = arith.constant dense<0xFF800000> : vector<2x8xf32>
    %168 = vector.multi_reduction <maximumf>, %167, %cst_83 [2] : vector<2x8x8xf32> to vector<2x8xf32>
    %169 = vector.shape_cast %168 : vector<2x8xf32> to vector<2x8x1xf32>
    %170 = vector.broadcast %169 : vector<2x8x1xf32> to vector<2x8x8xf32>
    %171 = arith.subf %167, %170 : vector<2x8x8xf32>
    %172 = math.exp %171 : vector<2x8x8xf32>
    %cst_84 = arith.constant dense<0.000000e+00> : vector<2x8xf32>
    %173 = vector.multi_reduction <add>, %172, %cst_84 [2] : vector<2x8x8xf32> to vector<2x8xf32>
    %174 = vector.shape_cast %173 : vector<2x8xf32> to vector<2x8x1xf32>
    %175 = tpu.reciprocal %174 {approx = true} : vector<2x8x1xf32> -> vector<2x8x1xf32>
    %176 = vector.broadcast %175 : vector<2x8x1xf32> to vector<2x8x8xf32>
    %177 = arith.mulf %172, %176 : vector<2x8x8xf32>
    "tpu.trace_start"() <{level = 10 : i32, message = "bqk,bkd->bqd"}> : () -> ()
    %cst_85 = arith.constant dense<0.000000e+00> : vector<2x8x16xf32>
    %178 = tpu.matmul %177, %162, %cst_85 {dimension_numbers = #tpu.dot_dimension_numbers<[2], [1], [1], [2], [0, 0, 0, 1, 1, 2], [0], [0]>} : vector<2x8x8xf32>, vector<2x8x16xf32>, vector<2x8x16xf32> -> vector<2x8x16xf32>
    "tpu.trace_stop"() : () -> ()
    %179 = vector.shape_cast %178 : vector<2x8x16xf32> to vector<16x16xf32>
    %180 = vector.extract_strided_slice %155 {offsets = [0, 0], sizes = [16, 32], strides = [1, 1]} : vector<32x32xf32> to vector<16x32xf32>
    %cst_86 = arith.constant dense<0.000000e+00> : vector<16x32xf32>
    %181 = tpu.matmul %179, %180, %cst_86 {dimension_numbers = #tpu.dot_dimension_numbers<[1], [0], [0], [1], [0, 0, 1, 1], [], []>} : vector<16x16xf32>, vector<16x32xf32>, vector<16x32xf32> -> vector<16x32xf32>
    %182 = arith.addf %156, %181 : vector<16x32xf32>
    %183 = vector.extract_strided_slice %153 {offsets = [0, 16], sizes = [16, 16], strides = [1, 1]} : vector<16x96xf32> to vector<16x16xf32>
    %184 = vector.shape_cast %183 : vector<16x16xf32> to vector<2x8x16xf32>
    %185 = vector.extract_strided_slice %153 {offsets = [0, 48], sizes = [16, 16], strides = [1, 1]} : vector<16x96xf32> to vector<16x16xf32>
    %186 = vector.shape_cast %185 : vector<16x16xf32> to vector<2x8x16xf32>
    %187 = vector.extract_strided_slice %153 {offsets = [0, 80], sizes = [16, 16], strides = [1, 1]} : vector<16x96xf32> to vector<16x16xf32>
    %188 = vector.shape_cast %187 : vector<16x16xf32> to vector<2x8x16xf32>
    "tpu.trace_start"() <{level = 10 : i32, message = "bqd,bkd->bqk"}> : () -> ()
    %cst_87 = arith.constant dense<0.000000e+00> : vector<2x8x8xf32>
    %189 = tpu.matmul %184, %186, %cst_87 {dimension_numbers = #tpu.dot_dimension_numbers<[2], [2], [1], [1], [0, 0, 0, 1, 1, 1], [0], [0]>} : vector<2x8x16xf32>, vector<2x8x16xf32>, vector<2x8x8xf32> -> vector<2x8x8xf32>
    "tpu.trace_stop"() : () -> ()
    %cst_88 = arith.constant 2.500000e-01 : f32
    %190 = vector.broadcast %cst_88 : f32 to vector<2x8x8xf32>
    %191 = arith.mulf %189, %190 : vector<2x8x8xf32>
    %192 = vector.broadcast %10 : vector<2x1x8xf32> to vector<2x8x8xf32>
    %193 = arith.addf %191, %192 : vector<2x8x8xf32>
    %cst_89 = arith.constant dense<0xFF800000> : vector<2x8xf32>
    %194 = vector.multi_reduction <maximumf>, %193, %cst_89 [2] : vector<2x8x8xf32> to vector<2x8xf32>
    %195 = vector.shape_cast %194 : vector<2x8xf32> to vector<2x8x1xf32>
    %196 = vector.broadcast %195 : vector<2x8x1xf32> to vector<2x8x8xf32>
    %197 = arith.subf %193, %196 : vector<2x8x8xf32>
    %198 = math.exp %197 : vector<2x8x8xf32>
    %cst_90 = arith.constant dense<0.000000e+00> : vector<2x8xf32>
    %199 = vector.multi_reduction <add>, %198, %cst_90 [2] : vector<2x8x8xf32> to vector<2x8xf32>
    %200 = vector.shape_cast %199 : vector<2x8xf32> to vector<2x8x1xf32>
    %201 = tpu.reciprocal %200 {approx = true} : vector<2x8x1xf32> -> vector<2x8x1xf32>
    %202 = vector.broadcast %201 : vector<2x8x1xf32> to vector<2x8x8xf32>
    %203 = arith.mulf %198, %202 : vector<2x8x8xf32>
    "tpu.trace_start"() <{level = 10 : i32, message = "bqk,bkd->bqd"}> : () -> ()
    %cst_91 = arith.constant dense<0.000000e+00> : vector<2x8x16xf32>
    %204 = tpu.matmul %203, %188, %cst_91 {dimension_numbers = #tpu.dot_dimension_numbers<[2], [1], [1], [2], [0, 0, 0, 1, 1, 2], [0], [0]>} : vector<2x8x8xf32>, vector<2x8x16xf32>, vector<2x8x16xf32> -> vector<2x8x16xf32>
    "tpu.trace_stop"() : () -> ()
    %205 = vector.shape_cast %204 : vector<2x8x16xf32> to vector<16x16xf32>
    %206 = vector.extract_strided_slice %155 {offsets = [16, 0], sizes = [16, 32], strides = [1, 1]} : vector<32x32xf32> to vector<16x32xf32>
    %cst_92 = arith.constant dense<0.000000e+00> : vector<16x32xf32>
    %207 = tpu.matmul %205, %206, %cst_92 {dimension_numbers = #tpu.dot_dimension_numbers<[1], [0], [0], [1], [0, 0, 1, 1], [], []>} : vector<16x16xf32>, vector<16x32xf32>, vector<16x32xf32> -> vector<16x32xf32>
    %208 = arith.addf %182, %207 : vector<16x32xf32>
    %c1_93 = arith.constant 1 : index
    %c0_94 = arith.constant 0 : index
    %c0_95 = arith.constant 0 : index
    %209 = vector.load %arg6[%c1_93, %c0_94, %c0_95] : memref<2x1x32xf32, #tpu.memory_space<vmem>>, vector<1x1x32xf32>
    %210 = vector.shape_cast %209 : vector<1x1x32xf32> to vector<1x32xf32>
    %211 = vector.broadcast %210 : vector<1x32xf32> to vector<16x32xf32>
    %212 = arith.addf %208, %211 : vector<16x32xf32>
    %213 = arith.addf %212, %146 : vector<16x32xf32>
    %c1_96 = arith.constant 1 : index
    %c0_97 = arith.constant 0 : index
    %c0_98 = arith.constant 0 : index
    %214 = vector.load %arg7[%c1_96, %c0_97, %c0_98] : memref<2x1x32xf32, #tpu.memory_space<vmem>>, vector<1x1x32xf32>
    %215 = vector.shape_cast %214 : vector<1x1x32xf32> to vector<1x32xf32>
    %c1_99 = arith.constant 1 : index
    %c0_100 = arith.constant 0 : index
    %c0_101 = arith.constant 0 : index
    %216 = vector.load %arg8[%c1_99, %c0_100, %c0_101] : memref<2x1x32xf32, #tpu.memory_space<vmem>>, vector<1x1x32xf32>
    %217 = vector.shape_cast %216 : vector<1x1x32xf32> to vector<1x32xf32>
    %cst_102 = arith.constant dense<0.000000e+00> : vector<16xf32>
    %218 = vector.multi_reduction <add>, %213, %cst_102 [1] : vector<16x32xf32> to vector<16xf32>
    %219 = vector.shape_cast %218 : vector<16xf32> to vector<16x1xf32>
    %cst_103 = arith.constant 3.200000e+01 : f32
    %220 = vector.broadcast %cst_103 : f32 to vector<16x1xf32>
    %221 = arith.divf %219, %220 : vector<16x1xf32>
    %222 = vector.broadcast %221 : vector<16x1xf32> to vector<16x32xf32>
    %223 = arith.subf %213, %222 : vector<16x32xf32>
    %224 = arith.mulf %223, %223 : vector<16x32xf32>
    %cst_104 = arith.constant dense<0.000000e+00> : vector<16xf32>
    %225 = vector.multi_reduction <add>, %224, %cst_104 [1] : vector<16x32xf32> to vector<16xf32>
    %226 = vector.shape_cast %225 : vector<16xf32> to vector<16x1xf32>
    %cst_105 = arith.constant 3.200000e+01 : f32
    %227 = vector.broadcast %cst_105 : f32 to vector<16x1xf32>
    %228 = arith.divf %226, %227 : vector<16x1xf32>
    %229 = vector.broadcast %221 : vector<16x1xf32> to vector<16x32xf32>
    %230 = arith.subf %213, %229 : vector<16x32xf32>
    %cst_106 = arith.constant 9.99999997E-7 : f32
    %231 = vector.broadcast %cst_106 : f32 to vector<16x1xf32>
    %232 = arith.addf %228, %231 : vector<16x1xf32>
    %233 = math.rsqrt %232 : vector<16x1xf32>
    %234 = vector.broadcast %233 : vector<16x1xf32> to vector<16x32xf32>
    %235 = arith.mulf %230, %234 : vector<16x32xf32>
    %236 = vector.broadcast %215 : vector<1x32xf32> to vector<16x32xf32>
    %237 = arith.mulf %235, %236 : vector<16x32xf32>
    %238 = vector.broadcast %217 : vector<1x32xf32> to vector<16x32xf32>
    %239 = arith.addf %237, %238 : vector<16x32xf32>
    %c1_107 = arith.constant 1 : index
    %c0_108 = arith.constant 0 : index
    %c0_109 = arith.constant 0 : index
    %240 = vector.load %arg9[%c1_107, %c0_108, %c0_109] : memref<2x32x64xf32, #tpu.memory_space<vmem>>, vector<1x32x64xf32>
    %241 = vector.shape_cast %240 : vector<1x32x64xf32> to vector<32x64xf32>
    %cst_110 = arith.constant dense<0.000000e+00> : vector<16x64xf32>
    %242 = tpu.matmul %239, %241, %cst_110 {dimension_numbers = #tpu.dot_dimension_numbers<[1], [0], [0], [1], [0, 0, 1, 1], [], []>} : vector<16x32xf32>, vector<32x64xf32>, vector<16x64xf32> -> vector<16x64xf32>
    %c1_111 = arith.constant 1 : index
    %c0_112 = arith.constant 0 : index
    %c0_113 = arith.constant 0 : index
    %243 = vector.load %arg10[%c1_111, %c0_112, %c0_113] : memref<2x1x64xf32, #tpu.memory_space<vmem>>, vector<1x1x64xf32>
    %244 = vector.shape_cast %243 : vector<1x1x64xf32> to vector<1x64xf32>
    %245 = vector.broadcast %244 : vector<1x64xf32> to vector<16x64xf32>
    %246 = arith.addf %242, %245 : vector<16x64xf32>
    %cst_114 = arith.constant 0.000000e+00 : f32
    %247 = vector.broadcast %cst_114 : f32 to vector<16x64xf32>
    %248 = arith.maximumf %246, %247 : vector<16x64xf32>
    %c1_115 = arith.constant 1 : index
    %c0_116 = arith.constant 0 : index
    %c0_117 = arith.constant 0 : index
    %249 = vector.load %arg11[%c1_115, %c0_116, %c0_117] : memref<2x64x32xf32, #tpu.memory_space<vmem>>, vector<1x64x32xf32>
    %250 = vector.shape_cast %249 : vector<1x64x32xf32> to vector<64x32xf32>
    %cst_118 = arith.constant dense<0.000000e+00> : vector<16x32xf32>
    %251 = tpu.matmul %248, %250, %cst_118 {dimension_numbers = #tpu.dot_dimension_numbers<[1], [0], [0], [1], [0, 0, 1, 1], [], []>} : vector<16x64xf32>, vector<64x32xf32>, vector<16x32xf32> -> vector<16x32xf32>
    %c1_119 = arith.constant 1 : index
    %c0_120 = arith.constant 0 : index
    %c0_121 = arith.constant 0 : index
    %252 = vector.load %arg12[%c1_119, %c0_120, %c0_121] : memref<2x1x32xf32, #tpu.memory_space<vmem>>, vector<1x1x32xf32>
    %253 = vector.shape_cast %252 : vector<1x1x32xf32> to vector<1x32xf32>
    %254 = vector.broadcast %253 : vector<1x32xf32> to vector<16x32xf32>
    %255 = arith.addf %251, %254 : vector<16x32xf32>
    %256 = arith.addf %255, %239 : vector<16x32xf32>
    %c1_122 = arith.constant 1 : index
    %c0_123 = arith.constant 0 : index
    %c0_124 = arith.constant 0 : index
    %257 = vector.load %arg13[%c1_122, %c0_123, %c0_124] : memref<2x1x32xf32, #tpu.memory_space<vmem>>, vector<1x1x32xf32>
    %258 = vector.shape_cast %257 : vector<1x1x32xf32> to vector<1x32xf32>
    %c1_125 = arith.constant 1 : index
    %c0_126 = arith.constant 0 : index
    %c0_127 = arith.constant 0 : index
    %259 = vector.load %arg14[%c1_125, %c0_126, %c0_127] : memref<2x1x32xf32, #tpu.memory_space<vmem>>, vector<1x1x32xf32>
    %260 = vector.shape_cast %259 : vector<1x1x32xf32> to vector<1x32xf32>
    %cst_128 = arith.constant dense<0.000000e+00> : vector<16xf32>
    %261 = vector.multi_reduction <add>, %256, %cst_128 [1] : vector<16x32xf32> to vector<16xf32>
    %262 = vector.shape_cast %261 : vector<16xf32> to vector<16x1xf32>
    %cst_129 = arith.constant 3.200000e+01 : f32
    %263 = vector.broadcast %cst_129 : f32 to vector<16x1xf32>
    %264 = arith.divf %262, %263 : vector<16x1xf32>
    %265 = vector.broadcast %264 : vector<16x1xf32> to vector<16x32xf32>
    %266 = arith.subf %256, %265 : vector<16x32xf32>
    %267 = arith.mulf %266, %266 : vector<16x32xf32>
    %cst_130 = arith.constant dense<0.000000e+00> : vector<16xf32>
    %268 = vector.multi_reduction <add>, %267, %cst_130 [1] : vector<16x32xf32> to vector<16xf32>
    %269 = vector.shape_cast %268 : vector<16xf32> to vector<16x1xf32>
    %cst_131 = arith.constant 3.200000e+01 : f32
    %270 = vector.broadcast %cst_131 : f32 to vector<16x1xf32>
    %271 = arith.divf %269, %270 : vector<16x1xf32>
    %272 = vector.broadcast %264 : vector<16x1xf32> to vector<16x32xf32>
    %273 = arith.subf %256, %272 : vector<16x32xf32>
    %cst_132 = arith.constant 9.99999997E-7 : f32
    %274 = vector.broadcast %cst_132 : f32 to vector<16x1xf32>
    %275 = arith.addf %271, %274 : vector<16x1xf32>
    %276 = math.rsqrt %275 : vector<16x1xf32>
    %277 = vector.broadcast %276 : vector<16x1xf32> to vector<16x32xf32>
    %278 = arith.mulf %273, %277 : vector<16x32xf32>
    %279 = vector.broadcast %258 : vector<1x32xf32> to vector<16x32xf32>
    %280 = arith.mulf %278, %279 : vector<16x32xf32>
    %281 = vector.broadcast %260 : vector<1x32xf32> to vector<16x32xf32>
    %282 = arith.addf %280, %281 : vector<16x32xf32>
    %c0_133 = arith.constant 0 : index
    %c0_134 = arith.constant 0 : index
    %283 = vector.load %arg15[%c0_133, %c0_134] : memref<1x32xf32, #tpu.memory_space<vmem>>, vector<1x32xf32>
    %c0_135 = arith.constant 0 : index
    %c0_136 = arith.constant 0 : index
    %284 = vector.load %arg16[%c0_135, %c0_136] : memref<1x32xf32, #tpu.memory_space<vmem>>, vector<1x32xf32>
    %cst_137 = arith.constant dense<0.000000e+00> : vector<16xf32>
    %285 = vector.multi_reduction <add>, %282, %cst_137 [1] : vector<16x32xf32> to vector<16xf32>
    %286 = vector.shape_cast %285 : vector<16xf32> to vector<16x1xf32>
    %cst_138 = arith.constant 3.200000e+01 : f32
    %287 = vector.broadcast %cst_138 : f32 to vector<16x1xf32>
    %288 = arith.divf %286, %287 : vector<16x1xf32>
    %289 = vector.broadcast %288 : vector<16x1xf32> to vector<16x32xf32>
    %290 = arith.subf %282, %289 : vector<16x32xf32>
    %291 = arith.mulf %290, %290 : vector<16x32xf32>
    %cst_139 = arith.constant dense<0.000000e+00> : vector<16xf32>
    %292 = vector.multi_reduction <add>, %291, %cst_139 [1] : vector<16x32xf32> to vector<16xf32>
    %293 = vector.shape_cast %292 : vector<16xf32> to vector<16x1xf32>
    %cst_140 = arith.constant 3.200000e+01 : f32
    %294 = vector.broadcast %cst_140 : f32 to vector<16x1xf32>
    %295 = arith.divf %293, %294 : vector<16x1xf32>
    %296 = vector.broadcast %288 : vector<16x1xf32> to vector<16x32xf32>
    %297 = arith.subf %282, %296 : vector<16x32xf32>
    %cst_141 = arith.constant 9.99999997E-7 : f32
    %298 = vector.broadcast %cst_141 : f32 to vector<16x1xf32>
    %299 = arith.addf %295, %298 : vector<16x1xf32>
    %300 = math.rsqrt %299 : vector<16x1xf32>
    %301 = vector.broadcast %300 : vector<16x1xf32> to vector<16x32xf32>
    %302 = arith.mulf %297, %301 : vector<16x32xf32>
    %303 = vector.broadcast %283 : vector<1x32xf32> to vector<16x32xf32>
    %304 = arith.mulf %302, %303 : vector<16x32xf32>
    %305 = vector.broadcast %284 : vector<1x32xf32> to vector<16x32xf32>
    %306 = arith.addf %304, %305 : vector<16x32xf32>
    %307 = vector.shape_cast %306 : vector<16x32xf32> to vector<2x8x32xf32>
    %c0_142 = arith.constant 0 : index
    %c0_143 = arith.constant 0 : index
    %c0_144 = arith.constant 0 : index
    %308 = vector.load %arg17[%c0_142, %c0_143, %c0_144] : memref<2x8x32xf32, #tpu.memory_space<vmem>>, vector<2x8x32xf32>
    tpu.vector_store %arg17[%c0_142, %c0_143, %c0_144], %307 {strides = array<i32>} : memref<2x8x32xf32, #tpu.memory_space<vmem>>, vector<2x8x32xf32>,
    return
  }
}

</mosaic_0001>

<bundles_post_ra>
// kernel: encoder_forward.1
= control target key start
LH: loop header
LB: loop body
LE: loop exit
PB: predicated region body
PF: predicated region fallthrough
CT: control target
= control target key end

     0   :  { %s1969_s0 = inlined_call_operand.vmem [shape: f32[2,8,32], index: 0, kind: input, shape index: {}]   ;;  %s1970_s1 = inlined_call_operand.vmem [shape: f32[8,32], index: 1, kind: input, shape index: {}]   ;;  %s1971_s2 = inlined_call_operand.vmem [shape: f32[2,1,8], index: 2, kind: input, shape index: {}]   ;;  %s1972_s3 = inlined_call_operand.vmem [shape: f32[2,32,96], index: 3, kind: input, shape index: {}]   ;;  %s1973_s4 = inlined_call_operand.vmem [shape: f32[2,1,96], index: 4, kind: input, shape index: {}]   ;;  %s1974_s5 = inlined_call_operand.vmem [shape: f32[2,32,32], index: 5, kind: input, shape index: {}]   ;;  %s1975_s6 = inlined_call_operand.vmem [shape: f32[2,1,32], index: 6, kind: input, shape index: {}]   ;;  %s1976_s7 = inlined_call_operand.vmem [shape: f32[2,1,32], index: 7, kind: input, shape index: {}]   ;;  %s1977_s8 = inlined_call_operand.vmem [shape: f32[2,1,32], index: 8, kind: input, shape index: {}]   ;;  %s1978_s9 = inlined_call_operand.vmem [shape: f32[2,32,64], index: 9, kind: input, shape index: {}]   ;;  %s1979_s10 = inlined_call_operand.vmem [shape: f32[2,1,64], index: 10, kind: input, shape index: {}]   ;;  %s1980_s11 = inlined_call_operand.vmem [shape: f32[2,64,32], index: 11, kind: input, shape index: {}]   ;;  %s1981_s12 = inlined_call_operand.vmem [shape: f32[2,1,32], index: 12, kind: input, shape index: {}]   ;;  %s1982_s13 = inlined_call_operand.vmem [shape: f32[2,1,32], index: 13, kind: input, shape index: {}]   ;;  %s1983_s14 = inlined_call_operand.vmem [shape: f32[2,1,32], index: 14, kind: input, shape index: {}]   ;;  %s1984_s15 = inlined_call_operand.vmem [shape: f32[1,32], index: 15, kind: input, shape index: {}]   ;;  %s1985_s16 = inlined_call_operand.vmem [shape: f32[1,32], index: 16, kind: input, shape index: {}]   ;;  %s1986_s17 = inlined_call_operand.hbm [shape: f32[2,8,32], index: 17, kind: output, shape index: {}]  }
   0x1   :  { %1988 = sst [smem:[#allocation5_spill]] %s1969_s0 }
   0x2   :  { %1989 = sst [smem:[#allocation6_spill]] %s1970_s1 }
   0x3   :  { %v71_v0 = vld [vmem:[%s1972_s3 + $0x18] sm:$0xff]  ;;  %v70_v1 = vld [vmem:[%s1972_s3 + $0x10] sm:$0xff]  ;;  %v69_v2 = vld [vmem:[%s1972_s3 + $0x8] sm:$0xff]  ;;  %s1990_s18 = sld [smem:[#allocation5_spill]]  ;;  %vm76_vm0 = vcmask 261120  }
   0x4   :  { %95 = vmatpush.msra.mxu0 %v71_v0  ;;  %s1991_s20 = sld [smem:[#allocation6_spill]]  ;;  %v68_v5 = vld [vmem:[%s1972_s3] sm:$0xff] }
   0x6   :  { %96 = vmatpush.msra.mxu0 %v70_v1 }
   0x8   :  { %97 = vmatpush.msra.mxu0 %v69_v2 }
   0x9   :  { %v57_v3 = vld [vmem:[%s1990_s18] sm:$0xff] }
   0xa   :  { %v59_v4 = vld [vmem:[%s1991_s20] sm:$0xff]  ;;  %98 = vmatpush.msra.mxu0 %v68_v5 }
   0xb   :  { %v1615_v6 = vadd.f32 %v59_v4, %v57_v3 }
   0xd   :  { %1309 = vmatmul.msk.f32.vlgmr.msra.gmra.mxu0 %vm76_vm0, %v1615_v6 }
   0xe   :  { %22 = vsyncpa [#allocation3], 0  ;;  %v1400_v7 = vld [vmem:[%s1973_s4] ss:$0 sm:$0xff]  ;;  %s1498_s25 = smov 64   ;;  %s1499_s26 = smov 96  }
   0xf   :  { %s1500_s27 = smov 80   ;;  %s1501_s28 = smov 112   ;;  %vm113_vm1 = vcmask 130048   ;;  %v58_v13 = vld [vmem:[%s1990_s18 + $0x8] sm:$0xff]  ;;  %v62_v15 = vld [vmem:[%s1971_s2] sm:$0x1] }
  0x10   :  { %v1639_v14 = vadd.f32 %v59_v4, %v58_v13  ;;  %v1307_v16 = vadd.f32 -1.0, %v62_v15  ;;  %vm175_vm2 = vcmask 64512   ;;  %v107_v31 = vld [vmem:[%s1974_s5 + $0x8] sm:$0xff]  ;;  %v106_v38 = vld [vmem:[%s1974_s5] sm:$0xff]  ;;  %vm564_vm10 = vcmask 523264  }
  0x11   :  { %433 = vmatpush.msrb.mxu0 %v107_v31  ;;  %v63_v43 = vld [vmem:[%s1971_s2 + $0x1] sm:$0x1]  ;;  %s1502_s2 = smov 48  }
  0x12   :  { %v66_v17 = vmul.f32 1e+09, %v1307_v16  ;;  %v1308_v45 = vadd.f32 -1.0, %v63_v43 }
  0x13   :  { %434 = vmatpush.msrb.mxu0 %v106_v38 }
  0x14   :  { %v1646_v18 = vperm.slane %v66_v17, 0  ;;  %v67_v46 = vmul.f32 1e+09, %v1308_v45 }
  0x15   :  { %1310 = vmatmul.msk.f32.gmra.mxu0 %vm76_vm0, %v1639_v14 }
  0x16   :  { %v1678_v47 = vperm.slane %v67_v46, 0 }
  0x8a   :  { %v100_v8 = vpop.f32.mrf.mxu0 }
  0x8b   :  { %v1622_v9 = vadd.f32 %v1400_v7, %v100_v8 }
  0x8d   :  { %198 = vrot.lane.b32.xlu2 %v1622_v9, %s1498_s25  ;;  %111 = vrot.lane.b32.xlu0 %v1622_v9, %s1499_s26 }
  0x92   :  { %v103_v23 = vpop.f32.mrf.mxu0 }
  0x93   :  { %v1650_v24 = vadd.f32 %v1400_v7, %v103_v23  ;;  %v108_v23 = vld [vmem:[%s1974_s5 + $0x10] sm:$0xff] }
  0x95   :  { %252 = vrot.lane.b32.xlu2 %v1622_v9, %s1500_s27 }
  0x9d   :  { %250 = vrot.lane.b32.xlu2 %v1622_v9, %s1501_s28 }
  0xa5   :  { %280 = vrot.lane.b32.xlu2 %v1650_v24, %s1500_s27 }
  0xad   :  { %278 = vrot.lane.b32.xlu2 %v1650_v24, %s1501_s28 }
  0xe7   :  { %v199_v10 = vpop.permute.xlu2 %198 }
  0xef   :  { %v253_v12 = vpop.permute.xlu2 %252 }
  0xf7   :  { %v251_v34 = vpop.permute.xlu2 %250 }
  0xff   :  { %v112_v11 = vpop.permute.xlu0 %111  ;;  %v281_v36 = vpop.permute.xlu2 %280 }
 0x100   :  { %1311 = vmatpush.xpose.msk.msra.mxu1 %vm113_vm1, %v112_v11 }
 0x103   :  { %1312 = vmatmul.msk.f32.vlgmr.msra.gmra.mxu1 %vm113_vm1, %v1622_v9 }
 0x104   :  { %219 = vmatpush.msrb.mxu1 %v199_v10 }
 0x106   :  { %1317 = vmatpush.xpose.msk.msra.mxu1 %vm113_vm1, %v253_v12 }
 0x107   :  { %v279_v37 = vpop.permute.xlu2 %278 }
 0x180   :  { %v135_v19 = vpop.f32.mrf.mxu1 }
 0x181   :  { %v165_v20 = vmul.f32 0.25, %v135_v19 }
 0x183   :  { %v173_v21 = vadd.f32 %v1646_v18, %v165_v20 }
 0x185   :  { %v176_v22 = vsel %vm175_vm2, %v173_v21, -inf }
 0x186   :  { %177 = vmax.xlane.f32.xlu0 %v176_v22  ;;  %v109_v22 = vld [vmem:[%s1974_s5 + $0x18] sm:$0xff] }
 0x1f9   :  { %v178_v25 = vpop.xlane.xlu0 %177 }
 0x1fa   :  { %v182_v26 = vsub.f32 %v173_v21, %v178_v25 }
 0x1fc   :  { %v184_v27 = vmul.f32 1.442695, %v182_v26 }
 0x1fe   :  { %1418 = vpow2.f32 %v184_v27  ;;  %v1401_v27 = vld [vmem:[%s1975_s6] ss:$0 sm:$0xff] }
 0x204   :  { %v1419_v28 = vpop.eup %1418 }
 0x205   :  { %v188_v29 = vsel %vm175_vm2, %v1419_v28, 0.0 }
 0x206   :  { %189 = vadd.xlane.f32.xlu1 %v188_v29 }
 0x21f   :  { %139 = vrot.lane.b32.xlu1 %v1650_v24, %s1499_s26 }
 0x279   :  { %v190_v30 = vpop.xlane.xlu1 %189 }
 0x27a   :  { %1420 = vrcp.f32 %v190_v30 }
 0x280   :  { %v1421_v32 = vpop.eup %1420 }
 0x281   :  { %v196_v33 = vmul.f32 %v1421_v32, %v1419_v28 }
 0x283   :  { %1315 = vmatmul.msk.f32.vlgmr.msrb.gmra.mxu1 %vm175_vm2, %v196_v33 }
 0x28b   :  { %1318 = vmatmul.msk.f32.vlgmr.msra.gmra.mxu1 %vm113_vm1, %v251_v34 }
 0x291   :  { %v140_v35 = vpop.permute.xlu1 %139 }
 0x292   :  { %1313 = vmatpush.xpose.msk.msra.mxu2 %vm113_vm1, %v140_v35 }
 0x295   :  { %1314 = vmatmul.msk.f32.vlgmr.msra.gmra.mxu2 %vm113_vm1, %v1650_v24 }
 0x296   :  { %1319 = vmatpush.xpose.msk.msrb.mxu2 %vm113_vm1, %v281_v36 }
 0x29a   :  { %404 = vmatpush.msra.mxu2 %v109_v22  ;;  %v1403_v22 = vld [vmem:[%s1977_s8] ss:$0 sm:$0xff] }
 0x29c   :  { %405 = vmatpush.msra.mxu2 %v108_v23 }
 0x29d   :  { %1320 = vmatmul.msk.f32.vlgmr.msrb.gmra.mxu2 %vm113_vm1, %v279_v37 }
 0x300   :  { %v221_v39 = vpop.f32.mrf.mxu1 }
 0x301   :  { %1325 = vmatmul.msk.f32.vlgmr.msrb.gmra.mxu0 %vm113_vm1, %v221_v39 }
 0x308   :  { %v275_v40 = vpop.f32.mrf.mxu1 }
 0x309   :  { %v306_v41 = vmul.f32 0.25, %v275_v40  ;;  %v1503_v40 = vmov 32.0  }
 0x30b   :  { %v308_v42 = vadd.f32 %v306_v41, %v1646_v18 }
 0x30d   :  { %v310_v44 = vsel %vm175_vm2, %v308_v42, -inf }
 0x30e   :  { %311 = vmax.xlane.f32.xlu2 %v310_v44 }
 0x318   :  { %v162_v48 = vpop.f32.mrf.mxu2 }
 0x319   :  { %v166_v49 = vmul.f32 0.25, %v162_v48 }
 0x31b   :  { %v174_v50 = vadd.f32 %v1678_v47, %v166_v49 }
 0x31d   :  { %v179_v51 = vsel %vm175_vm2, %v174_v50, -inf }
 0x31e   :  { %180 = vmax.xlane.f32.xlu1 %v179_v51 }
 0x320   :  { %v303_v52 = vpop.f32.mrf.mxu2 }
 0x321   :  { %v307_v53 = vmul.f32 0.25, %v303_v52 }
 0x323   :  { %v309_v54 = vadd.f32 %v307_v53, %v1678_v47 }
 0x325   :  { %v313_v55 = vsel %vm175_vm2, %v309_v54, -inf }
 0x326   :  { %314 = vmax.xlane.f32.xlu0 %v313_v55 }
 0x337   :  { %332 = vrot.lane.b32.xlu1 %v1622_v9, %s1502_s2 }
 0x37e   :  { %v436_v28 = vpop.f32.mrf.mxu0 }
 0x381   :  { %v312_v56 = vpop.xlane.xlu2 %311 }
 0x382   :  { %v316_v59 = vsub.f32 %v308_v42, %v312_v56  ;;  %v516_v56 = vld [vmem:[%s1978_s9 + $0x18] sm:$0xff] }
 0x384   :  { %v318_v61 = vmul.f32 1.442695, %v316_v59  ;;  %v513_v59 = vld [vmem:[%s1978_s9] sm:$0xff] }
 0x391   :  { %v181_v57 = vpop.xlane.xlu1 %180 }
 0x392   :  { %v183_v58 = vsub.f32 %v174_v50, %v181_v57  ;;  %v515_v57 = vld [vmem:[%s1978_s9 + $0x10] sm:$0xff] }
 0x394   :  { %v186_v60 = vmul.f32 1.442695, %v183_v58  ;;  %v514_v58 = vld [vmem:[%s1978_s9 + $0x8] sm:$0xff] }
 0x396   :  { %1422 = vpow2.f32 %v186_v60 }
 0x397   :  { %1424 = vpow2.f32 %v318_v61 }
 0x399   :  { %v315_v62 = vpop.xlane.xlu0 %314 }
 0x39a   :  { %v317_v63 = vsub.f32 %v309_v54, %v315_v62 }
 0x39c   :  { %v1423_v0 = vpop.eup %1422  ;;  %v320_v1 = vmul.f32 1.442695, %v317_v63  ;;  %v559_v63 = vld [vmem:[%s1980_s11 + $0x38] sm:$0xff] }
 0x39d   :  { %v191_v2 = vsel %vm175_vm2, %v1423_v0, 0.0  ;;  %v1425_v3 = vpop.eup %1424 }
 0x39e   :  { %1426 = vpow2.f32 %v320_v1  ;;  %192 = vadd.xlane.f32.xlu0 %v191_v2  ;;  %v322_v7 = vsel %vm175_vm2, %v1425_v3, 0.0  ;;  %v557_v1 = vld [vmem:[%s1980_s11 + $0x28] sm:$0xff] }
 0x3a4   :  { %v1427_v4 = vpop.eup %1426 }
 0x3a5   :  { %v325_v5 = vsel %vm175_vm2, %v1427_v4, 0.0 }
 0x3a6   :  { %326 = vadd.xlane.f32.xlu2 %v325_v5  ;;  %323 = vadd.xlane.f32.xlu0 %v322_v7 }
 0x3a9   :  { %v333_v19 = vpop.permute.xlu1 %332 }
 0x3ba   :  { %224 = vrot.lane.b32.xlu0 %v1650_v24, %s1498_s25 }
 0x3be   :  { %358 = vrot.lane.b32.xlu2 %v1650_v24, %s1502_s2 }
 0x411   :  { %v193_v9 = vpop.xlane.xlu0 %192 }
 0x419   :  { %v327_v8 = vpop.xlane.xlu2 %326  ;;  %v324_v13 = vpop.xlane.xlu0 %323 }
 0x41a   :  { %1428 = vrcp.f32 %v327_v8  ;;  %v555_v8 = vld [vmem:[%s1980_s11 + $0x18] sm:$0xff] }
 0x41b   :  { %1430 = vrcp.f32 %v193_v9 }
 0x41c   :  { %1432 = vrcp.f32 %v324_v13 }
 0x41d   :  { %1434 = vrcp.f32 %v1503_v40 }
 0x420   :  { %v1429_v10 = vpop.eup %1428 }
 0x421   :  { %v331_v11 = vmul.f32 %v1429_v10, %v1427_v4  ;;  %v359_v12 = vpop.permute.xlu2 %358  ;;  %v1431_v15 = vpop.eup %1430  ;;  %v556_v4 = vld [vmem:[%s1980_s11 + $0x20] sm:$0xff] }
 0x422   :  { %379 = vmatpush.msrb.mxu1 %v359_v12  ;;  %v197_v17 = vmul.f32 %v1431_v15, %v1423_v0  ;;  %v1433_v20 = vpop.eup %1432  ;;  %v558_v0 = vld [vmem:[%s1980_s11 + $0x30] sm:$0xff] }
 0x423   :  { %1322 = vmatmul.msk.f32.vlgmr.msrb.gmra.mxu1 %vm175_vm2, %v331_v11  ;;  %v330_v21 = vmul.f32 %v1433_v20, %v1425_v3  ;;  %v1435_v41 = vpop.eup %1434 }
 0x424   :  { %v459_v42 = vmul.f32 32.0, %v1435_v41  ;;  %vm463_vm3 = vweird.f32 %v1435_v41  ;;  %579 = vmatpush.msra.mxu1 %v559_v63  ;;  %v1332_v63 = vld [vmem:[%s1972_s3 + $0x28] sm:$0xff] }
 0x426   :  { %v460_v43 = vsub.f32 1.0, %v459_v42  ;;  %580 = vmatpush.msra.mxu1 %v558_v0  ;;  %v1405_v42 = vld [vmem:[%s1981_s12] ss:$0 sm:$0xff] }
 0x427   :  { %v1331_v0 = vld [vmem:[%s1972_s3 + $0x20] sm:$0xff] }
 0x428   :  { %v461_v44 = vmul.f32 %v1435_v41, %v460_v43  ;;  %581 = vmatpush.msra.mxu1 %v557_v1 }
 0x42a   :  { %v462_v45 = vadd.f32 %v1435_v41, %v461_v44  ;;  %582 = vmatpush.msra.mxu1 %v556_v4 }
 0x42c   :  { %v225_v16 = vpop.permute.xlu0 %224  ;;  %583 = vmatpush.msra.mxu1 %v555_v8 }
 0x42d   :  { %245 = vmatpush.msra.mxu3 %v225_v16 }
 0x42e   :  { %1316 = vmatmul.msk.f32.vlgmr.msra.gmra.mxu3 %vm175_vm2, %v197_v17  ;;  %v1402_v17 = vld [vmem:[%s1976_s7] ss:$0 sm:$0xff] }
 0x42f   :  { %353 = vmatpush.msrb.mxu3 %v333_v19 }
 0x431   :  { %539 = vmatpush.msra.mxu3 %v516_v56 }
 0x433   :  { %540 = vmatpush.msra.mxu3 %v515_v57 }
 0x435   :  { %541 = vmatpush.msra.mxu3 %v514_v58 }
 0x436   :  { %1321 = vmatmul.msk.f32.vlgmr.msrb.gmra.mxu3 %vm175_vm2, %v330_v21 }
 0x437   :  { %542 = vmatpush.msra.mxu3 %v513_v59 }
 0x4a0   :  { %v381_v26 = vpop.f32.mrf.mxu1 }
 0x4b1   :  { %v247_v24 = vpop.f32.mrf.mxu3 }
 0x4b2   :  { %1326 = vmatmul.msk.f32.gmra.mxu0 %vm113_vm1, %v247_v24 }
 0x4b9   :  { %v355_v25 = vpop.f32.mrf.mxu3 }
 0x4ba   :  { %1323 = vmatmul.msk.f32.vlgmr.msra.gmra.mxu2 %vm113_vm1, %v355_v25 }
 0x4c2   :  { %1324 = vmatmul.msk.f32.gmra.mxu2 %vm113_vm1, %v381_v26 }
 0x52f   :  { %v439_v34 = vpop.f32.mrf.mxu0 }
 0x53d   :  { %v407_v29 = vpop.f32.mrf.mxu2 }
 0x53e   :  { %v437_v30 = vadd.f32 %v436_v28, %v407_v29 }
 0x540   :  { %v446_v31 = vadd.f32 %v1401_v27, %v437_v30 }
 0x542   :  { %v448_v32 = vadd.f32 %v446_v31, %v1615_v6  ;;  %v1712_v6 = vsel %vm463_vm3, %v1435_v41, %v462_v45 }
 0x544   :  { %v452_v33 = vsel %vm76_vm0, %v448_v32, 0.0 }
 0x545   :  { %453 = vadd.xlane.f32.xlu0 %v452_v33  ;;  %v410_v35 = vpop.f32.mrf.mxu2  ;;  %v553_v33 = vld [vmem:[%s1980_s11 + $0x8] sm:$0xff] }
 0x546   :  { %v440_v36 = vadd.f32 %v439_v34, %v410_v35  ;;  %v552_v34 = vld [vmem:[%s1980_s11] sm:$0xff] }
 0x547   :  { %v1404_v35 = vld [vmem:[%s1979_s10] ss:$0 sm:$0xff] }
 0x548   :  { %v447_v37 = vadd.f32 %v1401_v27, %v440_v36 }
 0x54a   :  { %v449_v38 = vadd.f32 %v447_v37, %v1639_v14 }
 0x54c   :  { %v455_v39 = vsel %vm76_vm0, %v449_v38, 0.0 }
 0x54d   :  { %456 = vadd.xlane.f32.xlu1 %v455_v39 }
 0x5b8   :  { %v454_v46 = vpop.xlane.xlu0 %453 }
 0x5b9   :  { %v465_v48 = vmul.f32 %v1712_v6, %v454_v46 }
 0x5bb   :  { %v467_v49 = vsub.f32 %v448_v32, %v465_v48  ;;  %v554_v32 = vld [vmem:[%s1980_s11 + $0x10] sm:$0xff] }
 0x5bc   :  { %584 = vmatpush.msra.mxu1 %v554_v32  ;;  %v1408_v32 = vld [vmem:[%s1973_s4 + $0x1] ss:$0 sm:$0xff] }
 0x5bd   :  { %v469_v50 = vmul.f32 %v467_v49, %v467_v49 }
 0x5be   :  { %585 = vmatpush.msra.mxu1 %v553_v33 }
 0x5bf   :  { %v471_v14 = vsel %vm76_vm0, %v469_v50, 0.0 }
 0x5c0   :  { %472 = vadd.xlane.f32.xlu2 %v471_v14  ;;  %v457_v51 = vpop.xlane.xlu1 %456  ;;  %586 = vmatpush.msra.mxu1 %v552_v34 }
 0x5c1   :  { %v466_v52 = vmul.f32 %v1712_v6, %v457_v51 }
 0x5c3   :  { %v468_v53 = vsub.f32 %v449_v38, %v466_v52 }
 0x5c5   :  { %v470_v54 = vmul.f32 %v468_v53, %v468_v53 }
 0x5c7   :  { %v474_v55 = vsel %vm76_vm0, %v470_v54, 0.0 }
 0x5c8   :  { %475 = vadd.xlane.f32.xlu0 %v474_v55 }
 0x633   :  { %v473_v60 = vpop.xlane.xlu2 %472 }
 0x634   :  { %v477_v61 = vmul.f32 %v473_v60, %v1712_v6 }
 0x636   :  { %v479_v62 = vadd.f32 1e-06, %v477_v61  ;;  %v1334_v61 = vld [vmem:[%s1972_s3 + $0x38] sm:$0xff] }
 0x637   :  { %680 = vmatpush.msrb.mxu2 %v1334_v61 }
 0x638   :  { %1436 = vrsqrt.f32 %v479_v62  ;;  %vm487_vm5 = vweird.f32 %v479_v62 }
 0x63b   :  { %v476_v2 = vpop.xlane.xlu0 %475 }
 0x63c   :  { %v478_v3 = vmul.f32 %v476_v2, %v1712_v6 }
 0x63e   :  { %v1437_v5 = vpop.eup %1436  ;;  %v480_v7 = vadd.f32 1e-06, %v478_v3 }
 0x63f   :  { %v482_v9 = vmul.f32 %v1437_v5, %v479_v62  ;;  %vm488_vm4 = vweird.f32 %v1437_v5  ;;  %v1333_v62 = vld [vmem:[%s1972_s3 + $0x30] sm:$0xff] }
 0x640   :  { %1438 = vrsqrt.f32 %v480_v7  ;;  %vm489_vm6 = vmor %vm487_vm5, %vm488_vm4  ;;  %vm497_vm8 = vweird.f32 %v480_v7  ;;  %681 = vmatpush.msrb.mxu2 %v1333_v62 }
 0x641   :  { %v483_v10 = vmul.f32 %v1437_v5, %v482_v9 }
 0x642   :  { %682 = vmatpush.msrb.mxu2 %v1332_v63 }
 0x643   :  { %v484_v11 = vmul.f32 0.5, %v483_v10 }
 0x644   :  { %683 = vmatpush.msrb.mxu2 %v1331_v0 }
 0x645   :  { %v485_v12 = vsub.f32 1.5, %v484_v11 }
 0x646   :  { %v1439_v13 = vpop.eup %1438 }
 0x647   :  { %v486_v15 = vmul.f32 %v1437_v5, %v485_v12  ;;  %v492_v16 = vmul.f32 %v1439_v13, %v480_v7  ;;  %vm498_vm7 = vweird.f32 %v1439_v13 }
 0x648   :  { %vm499_vm9 = vmor %vm497_vm8, %vm498_vm7 }
 0x649   :  { %v490_v19 = vsel %vm489_vm6, %v1437_v5, %v486_v15  ;;  %v493_v20 = vmul.f32 %v1439_v13, %v492_v16 }
 0x64a   :  { %v501_v21 = vmul.f32 %v490_v19, %v467_v49 }
 0x64b   :  { %v494_v23 = vmul.f32 0.5, %v493_v20 }
 0x64c   :  { %v506_v24 = vmul.f32 %v1402_v17, %v501_v21 }
 0x64d   :  { %v495_v25 = vsub.f32 1.5, %v494_v23 }
 0x64e   :  { %v511_v26 = vadd.f32 %v1403_v22, %v506_v24 }
 0x64f   :  { %v496_v27 = vmul.f32 %v1439_v13, %v495_v25 }
 0x650   :  { %1327 = vmatmul.msk.f32.vlgmr.msra.gmra.mxu3 %vm76_vm0, %v511_v26 }
 0x651   :  { %v500_v28 = vsel %vm499_vm9, %v1439_v13, %v496_v27 }
 0x652   :  { %v502_v29 = vmul.f32 %v500_v28, %v468_v53 }
 0x654   :  { %v507_v30 = vmul.f32 %v1402_v17, %v502_v29  ;;  %v1406_v17 = vld [vmem:[%s1982_s13] ss:$0 sm:$0xff] }
 0x656   :  { %v512_v31 = vadd.f32 %v1403_v22, %v507_v30  ;;  %v1407_v22 = vld [vmem:[%s1983_s14] ss:$0 sm:$0xff] }
 0x658   :  { %1328 = vmatmul.msk.f32.gmra.mxu3 %vm76_vm0, %v512_v31 }
 0x6d3   :  { %v544_v36 = vpop.f32.mrf.mxu3 }
 0x6d4   :  { %v545_v37 = vadd.f32 %v1404_v35, %v544_v36 }
 0x6d6   :  { %v550_v38 = vmax.f32 %v545_v37, 0.0 }
 0x6d8   :  { %1329 = vmatmul.msk.f32.vlgmr.msra.gmra.mxu1 %vm564_vm10, %v550_v38 }
 0x6db   :  { %v547_v39 = vpop.f32.mrf.mxu3 }
 0x6dc   :  { %v548_v40 = vadd.f32 %v1404_v35, %v547_v39 }
 0x6de   :  { %v551_v41 = vmax.f32 %v548_v40, 0.0 }
 0x6e0   :  { %1330 = vmatmul.msk.f32.gmra.mxu1 %vm564_vm10, %v551_v41 }
 0x755   :  { %v588_v43 = vpop.f32.mrf.mxu1 }
 0x756   :  { %v589_v44 = vadd.f32 %v1405_v42, %v588_v43 }
 0x758   :  { %v594_v45 = vadd.f32 %v589_v44, %v511_v26 }
 0x75a   :  { %v598_v46 = vsel %vm76_vm0, %v594_v45, 0.0 }
 0x75b   :  { %599 = vadd.xlane.f32.xlu1 %v598_v46 }
 0x75d   :  { %v591_v48 = vpop.f32.mrf.mxu1 }
 0x75e   :  { %v592_v49 = vadd.f32 %v1405_v42, %v591_v48 }
 0x760   :  { %v595_v50 = vadd.f32 %v592_v49, %v512_v31 }
 0x762   :  { %v601_v14 = vsel %vm76_vm0, %v595_v50, 0.0 }
 0x763   :  { %602 = vadd.xlane.f32.xlu0 %v601_v14 }
 0x7ce   :  { %v600_v51 = vpop.xlane.xlu1 %599 }
 0x7cf   :  { %v604_v52 = vmul.f32 %v600_v51, %v1712_v6 }
 0x7d1   :  { %v606_v53 = vsub.f32 %v594_v45, %v604_v52 }
 0x7d3   :  { %v608_v54 = vmul.f32 %v606_v53, %v606_v53 }
 0x7d5   :  { %v610_v55 = vsel %vm76_vm0, %v608_v54, 0.0 }
 0x7d6   :  { %v603_v56 = vpop.xlane.xlu0 %602  ;;  %611 = vadd.xlane.f32.xlu1 %v610_v55 }
 0x7d7   :  { %v605_v57 = vmul.f32 %v603_v56, %v1712_v6 }
 0x7d9   :  { %v607_v58 = vsub.f32 %v595_v50, %v605_v57 }
 0x7db   :  { %v609_v59 = vmul.f32 %v607_v58, %v607_v58 }
 0x7dd   :  { %v613_v60 = vsel %vm76_vm0, %v609_v59, 0.0 }
 0x7de   :  { %614 = vadd.xlane.f32.xlu0 %v613_v60 }
 0x849   :  { %v612_v1 = vpop.xlane.xlu1 %611 }
 0x84a   :  { %v616_v2 = vmul.f32 %v612_v1, %v1712_v6 }
 0x84c   :  { %v618_v3 = vadd.f32 1e-06, %v616_v2 }
 0x84e   :  { %1440 = vrsqrt.f32 %v618_v3  ;;  %vm626_vm12 = vweird.f32 %v618_v3 }
 0x851   :  { %v615_v4 = vpop.xlane.xlu0 %614 }
 0x852   :  { %v617_v5 = vmul.f32 %v615_v4, %v1712_v6 }
 0x854   :  { %v1441_v7 = vpop.eup %1440  ;;  %v619_v8 = vadd.f32 1e-06, %v617_v5 }
 0x855   :  { %v621_v9 = vmul.f32 %v1441_v7, %v618_v3  ;;  %vm627_vm11 = vweird.f32 %v1441_v7 }
 0x856   :  { %1442 = vrsqrt.f32 %v619_v8  ;;  %vm628_vm13 = vmor %vm626_vm12, %vm627_vm11  ;;  %vm636_vm15 = vweird.f32 %v619_v8 }
 0x857   :  { %v622_v10 = vmul.f32 %v1441_v7, %v621_v9 }
 0x859   :  { %v623_v11 = vmul.f32 0.5, %v622_v10 }
 0x85b   :  { %v624_v12 = vsub.f32 1.5, %v623_v11 }
 0x85c   :  { %v1443_v13 = vpop.eup %1442 }
 0x85d   :  { %v625_v15 = vmul.f32 %v1441_v7, %v624_v12  ;;  %v631_v16 = vmul.f32 %v1443_v13, %v619_v8  ;;  %vm637_vm14 = vweird.f32 %v1443_v13 }
 0x85e   :  { %vm638_vm3 = vmor %vm636_vm15, %vm637_vm14 }
 0x85f   :  { %v629_v19 = vsel %vm628_vm13, %v1441_v7, %v625_v15  ;;  %v632_v20 = vmul.f32 %v1443_v13, %v631_v16  ;;  %v1339_v16 = vld [vmem:[%s1974_s5 + $0x28] sm:$0xff] }
 0x860   :  { %v640_v21 = vmul.f32 %v629_v19, %v606_v53 }
 0x861   :  { %v633_v23 = vmul.f32 0.5, %v632_v20 }
 0x862   :  { %v645_v24 = vmul.f32 %v1406_v17, %v640_v21 }
 0x863   :  { %v634_v25 = vsub.f32 1.5, %v633_v23 }
 0x864   :  { %v1798_v26 = vadd.f32 %v1407_v22, %v645_v24 }
 0x865   :  { %v635_v27 = vmul.f32 %v1443_v13, %v634_v25 }
 0x866   :  { %1336 = vmatmul.msk.f32.vlgmr.msrb.gmra.mxu2 %vm76_vm0, %v1798_v26 }
 0x867   :  { %v639_v28 = vsel %vm638_vm3, %v1443_v13, %v635_v27 }
 0x868   :  { %v641_v29 = vmul.f32 %v639_v28, %v607_v58 }
 0x86a   :  { %v646_v30 = vmul.f32 %v1406_v17, %v641_v29 }
 0x86c   :  { %v1802_v31 = vadd.f32 %v1407_v22, %v646_v30 }
 0x86e   :  { %1337 = vmatmul.msk.f32.gmra.mxu2 %vm76_vm0, %v1802_v31 }
 0x8e9   :  { %v685_v33 = vpop.f32.mrf.mxu2 }
 0x8ea   :  { %v1809_v34 = vadd.f32 %v1408_v32, %v685_v33 }
 0x8ec   :  { %697 = vrot.lane.b32.xlu1 %v1809_v34, %s1499_s26 }
 0x8f1   :  { %v688_v35 = vpop.f32.mrf.mxu2 }
 0x8f2   :  { %v1813_v36 = vadd.f32 %v1408_v32, %v688_v35 }
 0x8f4   :  { %858 = vrot.lane.b32.xlu0 %v1813_v36, %s1500_s27  ;;  %724 = vrot.lane.b32.xlu2 %v1813_v36, %s1499_s26  ;;  %v1390_v15 = vpack.i.bf16 %v1813_v36, %v1809_v34 }
 0x8f5   :  { %828 = vrot.lane.b32.xlu1 %v1809_v34, %s1501_s28 }
 0x8fc   :  { %856 = vrot.lane.b32.xlu2 %v1813_v36, %s1501_s28  ;;  %830 = vrot.lane.b32.xlu0 %v1809_v34, %s1500_s27  ;;  %s1295_s28 = sshll.u32 %s1986_s17, 4  ;;  %s1296_s28 = int_to_ptr.hbm [resolvable:$true] %s1295_s28 }
 0x94e   :  { %v725_v37 = vpop.permute.xlu2 %724 }
 0x94f   :  { %1344 = vmatpush.xpose.msk.msrb.mxu3 %vm113_vm1, %v725_v37 }
 0x952   :  { %1345 = vmatmul.msk.f32.vlgmr.msrb.gmra.mxu3 %vm113_vm1, %v1813_v36 }
 0x956   :  { %v857_v40 = vpop.permute.xlu2 %856 }
 0x95e   :  { %v698_v38 = vpop.permute.xlu1 %697 }
 0x95f   :  { %1342 = vmatpush.xpose.msk.msra.mxu0 %vm113_vm1, %v698_v38  ;;  %v1338_v38 = vld [vmem:[%s1974_s5 + $0x20] sm:$0xff] }
 0x962   :  { %1343 = vmatmul.msk.f32.vlgmr.msra.gmra.mxu0 %vm113_vm1, %v1809_v34 }
 0x966   :  { %v859_v39 = vpop.permute.xlu0 %858 }
 0x967   :  { %1350 = vmatpush.xpose.msk.msra.mxu2 %vm113_vm1, %v859_v39  ;;  %v829_v42 = vpop.permute.xlu1 %828  ;;  %v1341_v39 = vld [vmem:[%s1974_s5 + $0x38] sm:$0xff] }
 0x96a   :  { %1351 = vmatmul.msk.f32.vlgmr.msra.gmra.mxu2 %vm113_vm1, %v857_v40  ;;  %v1340_v40 = vld [vmem:[%s1974_s5 + $0x30] sm:$0xff] }
 0x96b   :  { %1011 = vmatpush.msrb.mxu2 %v1339_v16 }
 0x96d   :  { %1012 = vmatpush.msrb.mxu2 %v1338_v38 }
 0x96e   :  { %v831_v41 = vpop.permute.xlu0 %830 }
 0x96f   :  { %1348 = vmatpush.xpose.msk.msrb.mxu1 %vm113_vm1, %v831_v41 }
 0x972   :  { %1349 = vmatmul.msk.f32.vlgmr.msrb.gmra.mxu1 %vm113_vm1, %v829_v42 }
 0x973   :  { %982 = vmatpush.msra.mxu1 %v1341_v39 }
 0x975   :  { %983 = vmatpush.msra.mxu1 %v1340_v40 }
 0x9d5   :  { %v747_v43 = vpop.f32.mrf.mxu3 }
 0x9d6   :  { %v751_v44 = vmul.f32 0.25, %v747_v43 }
 0x9d8   :  { %v753_v45 = vadd.f32 %v751_v44, %v1678_v47 }
 0x9da   :  { %v757_v46 = vsel %vm175_vm2, %v753_v45, -inf }
 0x9db   :  { %758 = vmax.xlane.f32.xlu0 %v757_v46  ;;  %v1409_v46 = vld [vmem:[%s1975_s6 + $0x1] ss:$0 sm:$0xff] }
 0x9df   :  { %v720_v48 = vpop.f32.mrf.mxu0 }
 0x9e0   :  { %v750_v49 = vmul.f32 0.25, %v720_v48 }
 0x9e2   :  { %v752_v50 = vadd.f32 %v750_v49, %v1646_v18 }
 0x9e4   :  { %v754_v14 = vsel %vm175_vm2, %v752_v50, -inf }
 0x9e5   :  { %755 = vmax.xlane.f32.xlu2 %v754_v14 }
 0x9ed   :  { %v881_v51 = vpop.f32.mrf.mxu2 }
 0x9ee   :  { %v885_v52 = vmul.f32 0.25, %v881_v51 }
 0x9ef   :  { %v853_v53 = vpop.f32.mrf.mxu1 }
 0x9f0   :  { %v884_v54 = vmul.f32 0.25, %v853_v53  ;;  %v887_v55 = vadd.f32 %v885_v52, %v1678_v47 }
 0x9f2   :  { %v891_v56 = vsel %vm175_vm2, %v887_v55, -inf  ;;  %v886_v57 = vadd.f32 %v884_v54, %v1646_v18 }
 0x9f3   :  { %892 = vmax.xlane.f32.xlu2 %v891_v56 }
 0x9f4   :  { %v888_v58 = vsel %vm175_vm2, %v886_v57, -inf }
 0x9f5   :  { %889 = vmax.xlane.f32.xlu1 %v888_v58 }
 0xa4e   :  { %v759_v59 = vpop.xlane.xlu0 %758 }
 0xa4f   :  { %v761_v60 = vsub.f32 %v753_v45, %v759_v59 }
 0xa51   :  { %v764_v61 = vmul.f32 1.442695, %v761_v60 }
 0xa53   :  { %1444 = vpow2.f32 %v764_v61 }
 0xa58   :  { %v756_v62 = vpop.xlane.xlu2 %755 }
 0xa59   :  { %v1445_v63 = vpop.eup %1444  ;;  %v760_v0 = vsub.f32 %v752_v50, %v756_v62 }
 0xa5a   :  { %v769_v1 = vsel %vm175_vm2, %v1445_v63, 0.0 }
 0xa5b   :  { %v762_v2 = vmul.f32 1.442695, %v760_v0  ;;  %770 = vadd.xlane.f32.xlu1 %v769_v1 }
 0xa5d   :  { %1446 = vpow2.f32 %v762_v2 }
 0xa63   :  { %v1447_v47 = vpop.eup %1446 }
 0xa64   :  { %v766_v3 = vsel %vm175_vm2, %v1447_v47, 0.0 }
 0xa65   :  { %767 = vadd.xlane.f32.xlu0 %v766_v3  ;;  %v1362_v3 = vld [vmem:[%s1978_s9 + $0x28] sm:$0xff] }
 0xa66   :  { %v893_v18 = vpop.xlane.xlu2 %892 }
 0xa67   :  { %v895_v4 = vsub.f32 %v887_v55, %v893_v18  ;;  %v1361_v18 = vld [vmem:[%s1978_s9 + $0x20] sm:$0xff] }
 0xa68   :  { %v890_v5 = vpop.xlane.xlu1 %889 }
 0xa69   :  { %v898_v7 = vmul.f32 1.442695, %v895_v4  ;;  %v894_v8 = vsub.f32 %v886_v57, %v890_v5 }
 0xa6b   :  { %1448 = vpow2.f32 %v898_v7  ;;  %v896_v9 = vmul.f32 1.442695, %v894_v8  ;;  %v1375_v8 = vld [vmem:[%s1980_s11 + $0x78] sm:$0xff] }
 0xa6d   :  { %1450 = vpow2.f32 %v896_v9  ;;  %v1374_v9 = vld [vmem:[%s1980_s11 + $0x70] sm:$0xff] }
 0xa71   :  { %v1449_v10 = vpop.eup %1448 }
 0xa72   :  { %v903_v11 = vsel %vm175_vm2, %v1449_v10, 0.0 }
 0xa73   :  { %v1451_v12 = vpop.eup %1450  ;;  %904 = vadd.xlane.f32.xlu1 %v903_v11 }
 0xa74   :  { %v900_v13 = vsel %vm175_vm2, %v1451_v12, 0.0 }
 0xa75   :  { %901 = vadd.xlane.f32.xlu2 %v900_v13  ;;  %v1372_v13 = vld [vmem:[%s1980_s11 + $0x60] sm:$0xff] }
 0xa79   :  { %1391 = vrot.lane.b32.xlu0 %v1390_v15, %s1498_s25 }
 0xa8d   :  { %1396 = vrot.lane.b32.xlu2 %v1390_v15, %s1502_s2  ;;  %s1506_s2 = smov 8  }
 0xace   :  { %v771_v17 = vpop.xlane.xlu1 %770 }
 0xacf   :  { %1452 = vrcp.f32 %v771_v17  ;;  %v1371_v17 = vld [vmem:[%s1980_s11 + $0x58] sm:$0xff] }
 0xad5   :  { %v1453_v22 = vpop.eup %1452 }
 0xad6   :  { %v775_v28 = vmul.f32 %v1453_v22, %v1445_v63 }
 0xad8   :  { %v768_v19 = vpop.xlane.xlu0 %767 }
 0xad9   :  { %1454 = vrcp.f32 %v768_v19 }
 0xadf   :  { %v1455_v23 = vpop.eup %1454 }
 0xae0   :  { %v774_v29 = vmul.f32 %v1455_v23, %v1447_v47  ;;  %v1363_v47 = vld [vmem:[%s1978_s9 + $0x30] sm:$0xff] }
 0xae6   :  { %v905_v20 = vpop.xlane.xlu1 %904 }
 0xae7   :  { %1456 = vrcp.f32 %v905_v20 }
 0xae8   :  { %v902_v21 = vpop.xlane.xlu2 %901 }
 0xae9   :  { %1458 = vrcp.f32 %v902_v21 }
 0xaeb   :  { %v1392_v24 = vpop.permute.xlu0 %1391 }
 0xaec   :  { %v1394_v25 = vunpack.i.h.bf16 %v1392_v24  ;;  %v1393_v27 = vunpack.i.l.bf16 %v1392_v24 }
 0xaed   :  { %v1457_v32 = vpop.eup %1456 }
 0xaee   :  { %797 = vmatpush.msrb.mxu0 %v1393_v27  ;;  %823 = vmatpush.msra.mxu3 %v1394_v25  ;;  %v909_v36 = vmul.f32 %v1457_v32, %v1449_v10  ;;  %v1373_v10 = vld [vmem:[%s1980_s11 + $0x68] sm:$0xff]  ;;  %v1410_v27 = vld [vmem:[%s1976_s7 + $0x1] ss:$0 sm:$0xff] }
 0xaef   :  { %1346 = vmatmul.msk.f32.vlgmr.msrb.gmra.mxu0 %vm175_vm2, %v774_v29  ;;  %1347 = vmatmul.msk.f32.vlgmr.msra.gmra.mxu3 %vm175_vm2, %v775_v28  ;;  %v1459_v35 = vpop.eup %1458  ;;  %v1411_v32 = vld [vmem:[%s1977_s8 + $0x1] ss:$0 sm:$0xff] }
 0xaf0   :  { %v1397_v30 = vpop.permute.xlu2 %1396  ;;  %v908_v37 = vmul.f32 %v1459_v35, %v1451_v12 }
 0xaf1   :  { %v1399_v33 = vunpack.i.h.bf16 %v1397_v30  ;;  %v1398_v34 = vunpack.i.l.bf16 %v1397_v30 }
 0xaf3   :  { %931 = vmatpush.msra.mxu0 %v1398_v34  ;;  %957 = vmatpush.msrb.mxu3 %v1399_v33 }
 0xaf5   :  { %1156 = vmatpush.msra.mxu3 %v1375_v8 }
 0xaf7   :  { %1352 = vmatmul.msk.f32.vlgmr.msra.gmra.mxu0 %vm175_vm2, %v908_v37  ;;  %1353 = vmatmul.msk.f32.vlgmr.msrb.gmra.mxu3 %vm175_vm2, %v909_v36 }
 0xaf8   :  { %1157 = vmatpush.msra.mxu3 %v1374_v9 }
 0xafa   :  { %1158 = vmatpush.msra.mxu3 %v1373_v10 }
 0xafc   :  { %1159 = vmatpush.msra.mxu3 %v1372_v13 }
 0xafe   :  { %1160 = vmatpush.msra.mxu3 %v1371_v17 }
 0xb6c   :  { %v799_v41 = vpop.f32.mrf.mxu0 }
 0xb6d   :  { %1356 = vmatmul.msk.f32.vlgmr.msrb.gmra.mxu2 %vm113_vm1, %v799_v41 }
 0xb72   :  { %v825_v42 = vpop.f32.mrf.mxu3 }
 0xb74   :  { %v933_v43 = vpop.f32.mrf.mxu0 }
 0xb75   :  { %1354 = vmatmul.msk.f32.vlgmr.msra.gmra.mxu1 %vm113_vm1, %v933_v43  ;;  %1357 = vmatmul.msk.f32.gmra.mxu2 %vm113_vm1, %v825_v42  ;;  %v1370_v42 = vld [vmem:[%s1980_s11 + $0x50] sm:$0xff]  ;;  %v1369_v43 = vld [vmem:[%s1980_s11 + $0x48] sm:$0xff] }
 0xb76   :  { %1161 = vmatpush.msra.mxu3 %v1370_v42 }
 0xb78   :  { %1162 = vmatpush.msra.mxu3 %v1369_v43 }
 0xb7a   :  { %v959_v44 = vpop.f32.mrf.mxu3 }
 0xb7d   :  { %1355 = vmatmul.msk.f32.gmra.mxu1 %vm113_vm1, %v959_v44  ;;  %v1368_v44 = vld [vmem:[%s1980_s11 + $0x40] sm:$0xff] }
 0xb7e   :  { %1163 = vmatpush.msra.mxu3 %v1368_v44 }
 0xbf0   :  { %v1014_v45 = vpop.f32.mrf.mxu2 }
 0xbf2   :  { %v985_v48 = vpop.f32.mrf.mxu1 }
 0xbf3   :  { %v1015_v49 = vadd.f32 %v1014_v45, %v985_v48  ;;  %v1412_v45 = vld [vmem:[%s1979_s10 + $0x1] ss:$0 sm:$0xff] }
 0xbf5   :  { %v1025_v50 = vadd.f32 %v1409_v46, %v1015_v49 }
 0xbf7   :  { %v1027_v14 = vadd.f32 %v1025_v50, %v1798_v26 }
 0xbf8   :  { %v1017_v52 = vpop.f32.mrf.mxu2 }
 0xbf9   :  { %v1033_v51 = vsel %vm76_vm0, %v1027_v14, 0.0 }
 0xbfa   :  { %1034 = vadd.xlane.f32.xlu1 %v1033_v51  ;;  %v988_v53 = vpop.f32.mrf.mxu1 }
 0xbfb   :  { %v1018_v54 = vadd.f32 %v1017_v52, %v988_v53  ;;  %v1413_v52 = vld [vmem:[%s1981_s12 + $0x1] ss:$0 sm:$0xff] }
 0xbfd   :  { %v1026_v55 = vadd.f32 %v1409_v46, %v1018_v54 }
 0xbff   :  { %v1028_v56 = vadd.f32 %v1026_v55, %v1802_v31  ;;  %v1364_v31 = vld [vmem:[%s1978_s9 + $0x38] sm:$0xff] }
 0xc00   :  { %1115 = vmatpush.msrb.mxu0 %v1364_v31 }
 0xc01   :  { %v1036_v57 = vsel %vm76_vm0, %v1028_v56, 0.0 }
 0xc02   :  { %1037 = vadd.xlane.f32.xlu1 %v1036_v57  ;;  %1116 = vmatpush.msrb.mxu0 %v1363_v47 }
 0xc04   :  { %1117 = vmatpush.msrb.mxu0 %v1362_v3 }
 0xc06   :  { %1118 = vmatpush.msrb.mxu0 %v1361_v18 }
 0xc6d   :  { %v1035_v58 = vpop.xlane.xlu1 %1034 }
 0xc6e   :  { %v1039_v59 = vmul.f32 %v1035_v58, %v1712_v6 }
 0xc70   :  { %v1041_v60 = vsub.f32 %v1027_v14, %v1039_v59 }
 0xc72   :  { %v1043_v61 = vmul.f32 %v1041_v60, %v1041_v60 }
 0xc74   :  { %v1045_v62 = vsel %vm76_vm0, %v1043_v61, 0.0 }
 0xc75   :  { %1046 = vadd.xlane.f32.xlu0 %v1045_v62  ;;  %v1038_v26 = vpop.xlane.xlu1 %1037 }
 0xc76   :  { %v1040_v63 = vmul.f32 %v1038_v26, %v1712_v6 }
 0xc78   :  { %v1042_v0 = vsub.f32 %v1028_v56, %v1040_v63 }
 0xc7a   :  { %v1044_v1 = vmul.f32 %v1042_v0, %v1042_v0 }
 0xc7c   :  { %v1048_v2 = vsel %vm76_vm0, %v1044_v1, 0.0 }
 0xc7d   :  { %1049 = vadd.xlane.f32.xlu1 %v1048_v2 }
 0xce8   :  { %v1047_v4 = vpop.xlane.xlu0 %1046 }
 0xce9   :  { %v1051_v5 = vmul.f32 %v1047_v4, %v1712_v6 }
 0xceb   :  { %v1053_v7 = vadd.f32 1e-06, %v1051_v5 }
 0xced   :  { %1460 = vrsqrt.f32 %v1053_v7  ;;  %vm1061_vm2 = vweird.f32 %v1053_v7 }
 0xcf0   :  { %v1050_v11 = vpop.xlane.xlu1 %1049 }
 0xcf1   :  { %v1052_v12 = vmul.f32 %v1050_v11, %v1712_v6 }
 0xcf3   :  { %v1461_v15 = vpop.eup %1460  ;;  %v1054_v16 = vadd.f32 1e-06, %v1052_v12 }
 0xcf4   :  { %v1056_v19 = vmul.f32 %v1461_v15, %v1053_v7  ;;  %vm1062_vm1 = vweird.f32 %v1461_v15 }
 0xcf5   :  { %1462 = vrsqrt.f32 %v1054_v16  ;;  %vm1063_vm4 = vmor %vm1061_vm2, %vm1062_vm1  ;;  %vm1071_vm6 = vweird.f32 %v1054_v16 }
 0xcf6   :  { %v1057_v20 = vmul.f32 %v1461_v15, %v1056_v19 }
 0xcf8   :  { %v1058_v21 = vmul.f32 0.5, %v1057_v20  ;;  %v1414_v20 = vld [vmem:[%s1982_s13 + $0x1] ss:$0 sm:$0xff] }
 0xcfa   :  { %v1059_v22 = vsub.f32 1.5, %v1058_v21 }
 0xcfb   :  { %v1463_v23 = vpop.eup %1462 }
 0xcfc   :  { %v1060_v24 = vmul.f32 %v1461_v15, %v1059_v22  ;;  %v1066_v25 = vmul.f32 %v1463_v23, %v1054_v16  ;;  %vm1072_vm5 = vweird.f32 %v1463_v23 }
 0xcfd   :  { %vm1073_vm7 = vmor %vm1071_vm6, %vm1072_vm5 }
 0xcfe   :  { %v1064_v28 = vsel %vm1063_vm4, %v1461_v15, %v1060_v24  ;;  %v1067_v29 = vmul.f32 %v1463_v23, %v1066_v25  ;;  %v1415_v24 = vld [vmem:[%s1983_s14 + $0x1] ss:$0 sm:$0xff] }
 0xcff   :  { %v1075_v30 = vmul.f32 %v1064_v28, %v1041_v60 }
 0xd00   :  { %v1068_v33 = vmul.f32 0.5, %v1067_v29 }
 0xd01   :  { %v1080_v34 = vmul.f32 %v1410_v27, %v1075_v30 }
 0xd02   :  { %v1069_v35 = vsub.f32 1.5, %v1068_v33 }
 0xd03   :  { %v1085_v36 = vadd.f32 %v1411_v32, %v1080_v34 }
 0xd04   :  { %v1070_v37 = vmul.f32 %v1463_v23, %v1069_v35 }
 0xd05   :  { %1366 = vmatmul.msk.f32.vlgmr.msrb.gmra.mxu0 %vm76_vm0, %v1085_v36 }
 0xd06   :  { %v1074_v38 = vsel %vm1073_vm7, %v1463_v23, %v1070_v37 }
 0xd07   :  { %v1076_v39 = vmul.f32 %v1074_v38, %v1042_v0 }
 0xd09   :  { %v1081_v40 = vmul.f32 %v1410_v27, %v1076_v39 }
 0xd0b   :  { %v1086_v41 = vadd.f32 %v1411_v32, %v1081_v40 }
 0xd0d   :  { %1367 = vmatmul.msk.f32.gmra.mxu0 %vm76_vm0, %v1086_v41 }
 0xd82   :  { %v1120_v46 = vpop.f32.mrf.mxu0 }
 0xd83   :  { %v1121_v48 = vadd.f32 %v1412_v45, %v1120_v46 }
 0xd85   :  { %v1126_v49 = vmax.f32 %v1121_v48, 0.0 }
 0xd87   :  { %1377 = vmatmul.msk.f32.vlgmr.msra.gmra.mxu3 %vm564_vm10, %v1126_v49 }
 0xd8a   :  { %v1123_v50 = vpop.f32.mrf.mxu0 }
 0xd8b   :  { %v1124_v14 = vadd.f32 %v1412_v45, %v1123_v50 }
 0xd8d   :  { %v1127_v51 = vmax.f32 %v1124_v14, 0.0 }
 0xd8f   :  { %1378 = vmatmul.msk.f32.gmra.mxu3 %vm564_vm10, %v1127_v51 }
 0xe0a   :  { %v1165_v53 = vpop.f32.mrf.mxu3 }
 0xe0b   :  { %v1166_v54 = vadd.f32 %v1413_v52, %v1165_v53 }
 0xe0d   :  { %v1171_v55 = vadd.f32 %v1166_v54, %v1085_v36 }
 0xe0f   :  { %v1177_v56 = vsel %vm76_vm0, %v1171_v55, 0.0 }
 0xe10   :  { %1178 = vadd.xlane.f32.xlu2 %v1177_v56 }
 0xe12   :  { %v1168_v57 = vpop.f32.mrf.mxu3 }
 0xe13   :  { %v1169_v58 = vadd.f32 %v1413_v52, %v1168_v57 }
 0xe15   :  { %v1172_v59 = vadd.f32 %v1169_v58, %v1086_v41 }
 0xe17   :  { %v1180_v60 = vsel %vm76_vm0, %v1172_v59, 0.0 }
 0xe18   :  { %1181 = vadd.xlane.f32.xlu1 %v1180_v60 }
 0xe83   :  { %v1179_v61 = vpop.xlane.xlu2 %1178 }
 0xe84   :  { %v1183_v62 = vmul.f32 %v1179_v61, %v1712_v6 }
 0xe86   :  { %v1185_v26 = vsub.f32 %v1171_v55, %v1183_v62  ;;  %v1416_v62 = vld [vmem:[%s1984_s15] ss:$0 sm:$0xff]  ;;  %s1504_s15 = smov [#allocation2]  }
 0xe87   :  { %s1293_s25 = sshll.u32 %s1504_s15, 4  ;;  %s1294_s25 = int_to_ptr.vmem [resolvable:$true] %s1293_s25 }
 0xe88   :  { %v1187_v63 = vmul.f32 %v1185_v26, %v1185_v26 }
 0xe8a   :  { %v1189_v0 = vsel %vm76_vm0, %v1187_v63, 0.0 }
 0xe8b   :  { %1190 = vadd.xlane.f32.xlu1 %v1189_v0  ;;  %v1182_v1 = vpop.xlane.xlu1 %1181  ;;  %v1417_v0 = vld [vmem:[%s1985_s16] ss:$0 sm:$0xff]  ;;  %s1505_s16 = smov 128  }
 0xe8c   :  { %v1184_v2 = vmul.f32 %v1182_v1, %v1712_v6 }
 0xe8e   :  { %v1186_v31 = vsub.f32 %v1172_v59, %v1184_v2 }
 0xe90   :  { %v1188_v47 = vmul.f32 %v1186_v31, %v1186_v31 }
 0xe92   :  { %v1192_v3 = vsel %vm76_vm0, %v1188_v47, 0.0 }
 0xe93   :  { %1193 = vadd.xlane.f32.xlu1 %v1192_v3 }
 0xefe   :  { %v1191_v18 = vpop.xlane.xlu1 %1190 }
 0xeff   :  { %v1195_v4 = vmul.f32 %v1191_v18, %v1712_v6 }
 0xf01   :  { %v1197_v5 = vadd.f32 1e-06, %v1195_v4 }
 0xf03   :  { %1464 = vrsqrt.f32 %v1197_v5  ;;  %vm1205_vm9 = vweird.f32 %v1197_v5 }
 0xf06   :  { %v1194_v7 = vpop.xlane.xlu1 %1193 }
 0xf07   :  { %v1196_v8 = vmul.f32 %v1194_v7, %v1712_v6 }
 0xf09   :  { %v1465_v9 = vpop.eup %1464  ;;  %v1198_v10 = vadd.f32 1e-06, %v1196_v8 }
 0xf0a   :  { %v1200_v11 = vmul.f32 %v1465_v9, %v1197_v5  ;;  %vm1206_vm8 = vweird.f32 %v1465_v9 }
 0xf0b   :  { %1466 = vrsqrt.f32 %v1198_v10  ;;  %vm1207_vm10 = vmor %vm1205_vm9, %vm1206_vm8  ;;  %vm1215_vm12 = vweird.f32 %v1198_v10 }
 0xf0c   :  { %v1201_v12 = vmul.f32 %v1465_v9, %v1200_v11 }
 0xf0e   :  { %v1202_v13 = vmul.f32 0.5, %v1201_v12 }
 0xf10   :  { %v1203_v15 = vsub.f32 1.5, %v1202_v13 }
 0xf11   :  { %v1467_v16 = vpop.eup %1466 }
 0xf12   :  { %v1204_v17 = vmul.f32 %v1465_v9, %v1203_v15  ;;  %v1210_v19 = vmul.f32 %v1467_v16, %v1198_v10  ;;  %vm1216_vm11 = vweird.f32 %v1467_v16 }
 0xf13   :  { %vm1217_vm13 = vmor %vm1215_vm12, %vm1216_vm11 }
 0xf14   :  { %v1211_v21 = vmul.f32 %v1467_v16, %v1210_v19  ;;  %v1208_v22 = vsel %vm1207_vm10, %v1465_v9, %v1204_v17 }
 0xf15   :  { %v1219_v23 = vmul.f32 %v1208_v22, %v1185_v26 }
 0xf16   :  { %v1212_v25 = vmul.f32 0.5, %v1211_v21 }
 0xf17   :  { %v1224_v27 = vmul.f32 %v1414_v20, %v1219_v23 }
 0xf18   :  { %v1213_v28 = vsub.f32 1.5, %v1212_v25 }
 0xf19   :  { %v1229_v29 = vadd.f32 %v1415_v24, %v1224_v27 }
 0xf1a   :  { %v1214_v30 = vmul.f32 %v1467_v16, %v1213_v28 }
 0xf1b   :  { %v1233_v32 = vsel %vm76_vm0, %v1229_v29, 0.0 }
 0xf1c   :  { %1234 = vadd.xlane.f32.xlu1 %v1233_v32  ;;  %v1218_v33 = vsel %vm1217_vm13, %v1467_v16, %v1214_v30 }
 0xf1d   :  { %v1220_v34 = vmul.f32 %v1218_v33, %v1186_v31 }
 0xf1f   :  { %v1225_v35 = vmul.f32 %v1414_v20, %v1220_v34 }
 0xf21   :  { %v1230_v36 = vadd.f32 %v1415_v24, %v1225_v35 }
 0xf23   :  { %v1236_v37 = vsel %vm76_vm0, %v1230_v36, 0.0 }
 0xf24   :  { %1237 = vadd.xlane.f32.xlu0 %v1236_v37 }
 0xf8f   :  { %v1235_v38 = vpop.xlane.xlu1 %1234 }
 0xf90   :  { %v1239_v39 = vmul.f32 %v1235_v38, %v1712_v6 }
 0xf92   :  { %v1241_v40 = vsub.f32 %v1229_v29, %v1239_v39 }
 0xf94   :  { %v1243_v41 = vmul.f32 %v1241_v40, %v1241_v40 }
 0xf96   :  { %v1245_v42 = vsel %vm76_vm0, %v1243_v41, 0.0 }
 0xf97   :  { %v1238_v43 = vpop.xlane.xlu0 %1237  ;;  %1246 = vadd.xlane.f32.xlu1 %v1245_v42 }
 0xf98   :  { %v1240_v44 = vmul.f32 %v1238_v43, %v1712_v6 }
 0xf9a   :  { %v1242_v45 = vsub.f32 %v1230_v36, %v1240_v44 }
 0xf9c   :  { %v1244_v46 = vmul.f32 %v1242_v45, %v1242_v45 }
 0xf9e   :  { %v1248_v48 = vsel %vm76_vm0, %v1244_v46, 0.0 }
 0xf9f   :  { %1249 = vadd.xlane.f32.xlu0 %v1248_v48 }
0x100a   :  { %v1247_v49 = vpop.xlane.xlu1 %1246 }
0x100b   :  { %v1251_v50 = vmul.f32 %v1247_v49, %v1712_v6 }
0x100d   :  { %v1253_v14 = vadd.f32 1e-06, %v1251_v50 }
0x100f   :  { %1468 = vrsqrt.f32 %v1253_v14  ;;  %vm1261_vm15 = vweird.f32 %v1253_v14 }
0x1012   :  { %v1250_v51 = vpop.xlane.xlu0 %1249 }
0x1013   :  { %v1252_v52 = vmul.f32 %v1250_v51, %v1712_v6 }
0x1015   :  { %v1469_v53 = vpop.eup %1468  ;;  %v1254_v54 = vadd.f32 1e-06, %v1252_v52 }
0x1016   :  { %v1256_v55 = vmul.f32 %v1469_v53, %v1253_v14  ;;  %vm1262_vm14 = vweird.f32 %v1469_v53 }
0x1017   :  { %1470 = vrsqrt.f32 %v1254_v54  ;;  %vm1263_vm3 = vmor %vm1261_vm15, %vm1262_vm14  ;;  %vm1271_vm2 = vweird.f32 %v1254_v54 }
0x1018   :  { %v1257_v56 = vmul.f32 %v1469_v53, %v1256_v55 }
0x101a   :  { %v1258_v57 = vmul.f32 0.5, %v1257_v56 }
0x101c   :  { %v1259_v58 = vsub.f32 1.5, %v1258_v57 }
0x101d   :  { %v1471_v59 = vpop.eup %1470 }
0x101e   :  { %v1260_v60 = vmul.f32 %v1469_v53, %v1259_v58  ;;  %v1266_v61 = vmul.f32 %v1471_v59, %v1254_v54  ;;  %vm1272_vm1 = vweird.f32 %v1471_v59 }
0x101f   :  { %vm1273_vm4 = vmor %vm1271_vm2, %vm1272_vm1 }
0x1020   :  { %v1264_v26 = vsel %vm1263_vm3, %v1469_v53, %v1260_v60  ;;  %v1267_v63 = vmul.f32 %v1471_v59, %v1266_v61 }
0x1021   :  { %v1275_v6 = vmul.f32 %v1264_v26, %v1241_v40 }
0x1022   :  { %v1268_v1 = vmul.f32 0.5, %v1267_v63 }
0x1023   :  { %v1280_v2 = vmul.f32 %v1416_v62, %v1275_v6 }
0x1024   :  { %v1269_v31 = vsub.f32 1.5, %v1268_v1 }
0x1025   :  { %v1285_v47 = vadd.f32 %v1417_v0, %v1280_v2 }
0x1026   :  { %v1270_v3 = vmul.f32 %v1471_v59, %v1269_v31 }
0x1027   :  { %1287 = vst.msk [vmem:[#allocation2] sm:$0xff] %vm76_vm0, %v1285_v47 }
0x1028   :  { %v1274_v18 = vsel %vm1273_vm4, %v1471_v59, %v1270_v3 }
0x1029   :  { %v1276_v4 = vmul.f32 %v1274_v18, %v1242_v45 }
0x102b   :  { %v1281_v5 = vmul.f32 %v1416_v62, %v1276_v4 }
0x102d   :  { %v1286_v7 = vadd.f32 %v1417_v0, %v1281_v5 }
0x102f   :  { %1288 = vst.msk [vmem:[#allocation2 + $0x8] sm:$0xff] %vm76_vm0, %v1286_v7 }
0x1030   :  { %1301 = dma.vmem_to_hbm [thread:$0]  %s1294_s25, 256, %s1296_s28, [#allocation3], %s1505_s16, %s1505_s16, %s1506_s2  }
0x1031   :  { %1496 = dma.done.wait [#allocation3], 256  }
0x1032   :  { %1497 = vsyncadd [#allocation3], 4294967040 }
0x1033   :  { %1306 = vsyncpa [#allocation3], 1 }

</bundles_post_ra>
